<compile_context>
chip_gen: v7x
topology: tpu7x:2x2x1
jax: 0.10.0
libtpu: 0.0.40
codegen_flags: <defaults>
</compile_context>

<pallas_src>
import functools
import math

import jax
import jax.numpy as jnp
from jax import lax
from jax.experimental import pallas as pl
from jax.experimental.pallas import tpu as pltpu


_INV_SQRT2 = 0.7071067811865476


# ---------------------------------------------------------------------------
# Per-chip VMEM limit & tile selection
# ---------------------------------------------------------------------------
@functools.lru_cache(maxsize=1)
def _vmem_limit_bytes():
    """Scoped-VMEM limit: 3/4 of this chip's capacity (v5e/v6e: 128 MiB,
    v7x: 64 MiB), clamped, with a known-safe fallback."""
    try:
        cap = int(pltpu.get_tpu_info().vmem_capacity_bytes)
        return int(max(32 << 20, min((cap * 3) // 4, 100 << 20)))
    except Exception:
        return 32 << 20


def _pick_tile(n, cap, align=8):
    """Row-tile size: <= cap, `align`-aligned when possible, and giving the
    'parallel' grid at least 2 steps when n is large enough so both v7x
    TensorCores get work (no effect on single-TC v5e/v6e)."""
    if n <= align:
        return int(n)
    half = ((n + 1) // 2 + align - 1) // align * align   # ceil(n/2) -> align
    return int(max(align, min(cap, half)))


def _reorder_gates(w):
    """Permute the trailing 4H gate axis from PyTorch order (i, f, g, o) to
    (i, f, o | g): one contiguous sigmoid slab + one tanh slab.  A free,
    mathematically identical permutation applied to weights/bias only."""
    H = w.shape[-1] // 4
    return jnp.concatenate(
        [w[..., : 2 * H], w[..., 3 * H:], w[..., 2 * H: 3 * H]], axis=-1)


# ---------------------------------------------------------------------------
# Exact (erf-based) GELU via polynomial erf (only exp / VPU ops -> always lowers)
# ---------------------------------------------------------------------------
def _erf(x):
    p = 0.3275911
    a1, a2, a3, a4, a5 = (0.254829592, -0.284496736, 1.421413741,
                          -1.453152027, 1.061405429)
    ax = jnp.abs(x)
    t = 1.0 / (1.0 + p * ax)
    poly = ((((a5 * t + a4) * t + a3) * t + a2) * t + a1) * t
    y = 1.0 - poly * jnp.exp(-ax * ax)
    return jnp.where(x >= 0.0, y, -y)


def _gelu(y):
    return 0.5 * y * (1.0 + _erf(y * _INV_SQRT2))


# ---------------------------------------------------------------------------
# Fused LSTM layer kernel (gate projection + recurrence, state in VMEM)
# ---------------------------------------------------------------------------
def _lstm_steps(x_ref, wih_ref, b_ref, whh_ref, h_sc, c_sc, hs_ref, *, unroll):
    # x_ref  (Bt, L, In) f32   — raw inputs for this batch tile
    # wih_ref (In, 4H) bf16, whh_ref (H, 4H) bf16  — gate-permuted (i,f,o|g)
    # b_ref  (1, 4H) f32 = b_ih + b_hh (gate-permuted)
    # h_sc / c_sc (Bt, H) f32 scratch; hs_ref (Bt, L, H) f32 or None.
    _, L, _ = x_ref.shape
    H = whh_ref.shape[0]
    h_sc[...] = jnp.zeros_like(h_sc)
    c_sc[...] = jnp.zeros_like(c_sc)

    def step(t, carry):
        # Recurrent contribution: on the serial critical path -> bf16 MXU, f32 acc.
        hg = jnp.dot(h_sc[...].astype(jnp.bfloat16), whh_ref[...],
                     preferred_element_type=jnp.float32)            # (Bt, 4H)
        # Input-side contribution: independent of h_{t-1}, overlaps with the
        # recurrence (fused here so the (B,L,4H) xg tensor never touches HBM).
        x_t = x_ref[:, pl.ds(t, 1), :][:, 0, :].astype(jnp.bfloat16)  # (Bt, In)
        g = hg + jnp.dot(x_t, wih_ref[...],
                         preferred_element_type=jnp.float32) + b_ref[...]
        # Gate order (i, f, o | g): ONE sigmoid over 3H lanes, one tanh over H.
        sg = jax.nn.sigmoid(g[:, : 3 * H])
        i = sg[:, :H]
        f = sg[:, H: 2 * H]
        o = sg[:, 2 * H: 3 * H]
        gc = jnp.tanh(g[:, 3 * H:])
        c = f * c_sc[...] + i * gc
        h = o * jnp.tanh(c)
        c_sc[...] = c
        h_sc[...] = h
        if hs_ref is not None:                                  # full-seq mode
            hs_ref[:, pl.ds(t, 1), :] = h[:, None, :]           # time-major row
        return carry

    lax.fori_loop(0, L, step, None, unroll=unroll)


def _lstm_seq_kernel(x_ref, wih_ref, b_ref, whh_ref, hs_ref, h_sc, c_sc, *, unroll):
    _lstm_steps(x_ref, wih_ref, b_ref, whh_ref, h_sc, c_sc, hs_ref, unroll=unroll)


def _lstm_last_kernel(x_ref, wih_ref, b_ref, whh_ref, o_ref, h_sc, c_sc, *, unroll):
    _lstm_steps(x_ref, wih_ref, b_ref, whh_ref, h_sc, c_sc, None, unroll=unroll)
    o_ref[...] = h_sc[...]                       # only h_{L-1} leaves the kernel


def lstm_layer_pallas(x, w_ih, w_hh, b, *, last_only, tile_b=128):
    """One LSTM layer. x (B,L,In) f32; w_ih (In,4H); w_hh (H,4H); b (4H,).
    Returns (B,L,H) f32 (full sequence) or (B,H) f32 if last_only."""
    B, L, In = x.shape
    H = w_hh.shape[0]
    G = 4 * H
    bt = _pick_tile(B, tile_b)
    # Weight-side prep (tiny, one-shot): bf16 MXU operands, gate permutation.
    wih = _reorder_gates(jnp.asarray(w_ih, jnp.bfloat16))
    whh = _reorder_gates(jnp.asarray(w_hh, jnp.bfloat16))
    bb = _reorder_gates(jnp.asarray(b, jnp.float32)).reshape(1, G)
    # Full unroll only while vreg pressure is low; otherwise small partial
    # unroll keeps LLO scheduling visibility without spilling.
    unroll = True if (L <= 32 and bt <= 32) else 2

    if last_only:
        kernel = functools.partial(_lstm_last_kernel, unroll=unroll)
        out_shape = jax.ShapeDtypeStruct((B, H), jnp.float32)
        out_spec = pl.BlockSpec((bt, H), lambda i: (i, 0))
    else:
        kernel = functools.partial(_lstm_seq_kernel, unroll=unroll)
        out_shape = jax.ShapeDtypeStruct((B, L, H), jnp.float32)
        out_spec = pl.BlockSpec((bt, L, H), lambda i: (i, 0, 0))

    return pl.pallas_call(
        kernel,
        grid=(pl.cdiv(B, bt),),
        out_shape=out_shape,
        in_specs=[pl.BlockSpec((bt, L, In), lambda i: (i, 0, 0)),
                  pl.BlockSpec((In, G), lambda i: (0, 0)),
                  pl.BlockSpec((1, G), lambda i: (0, 0)),
                  pl.BlockSpec((H, G), lambda i: (0, 0))],
        out_specs=out_spec,
        scratch_shapes=[pltpu.VMEM((bt, H), jnp.float32),    # h state
                        pltpu.VMEM((bt, H), jnp.float32)],   # c state
        compiler_params=pltpu.CompilerParams(
            dimension_semantics=("parallel",),
            vmem_limit_bytes=_vmem_limit_bytes()),
    )(jnp.asarray(x, jnp.float32), wih, bb, whh)


# ---------------------------------------------------------------------------
# Fused head: Linear(H,4H) + exact GELU + Linear(4H,H) + fc, last step only
# ---------------------------------------------------------------------------
def _head_kernel(h_ref, w1_ref, b1_ref, w2_ref, b2_ref, wf_ref, bf_ref, o_ref):
    h = h_ref[...].astype(jnp.bfloat16)          # per-tile cast inside the kernel
    t = jnp.dot(h, w1_ref[...], preferred_element_type=jnp.float32) + b1_ref[...]
    t = _gelu(t)
    t = jnp.dot(t.astype(jnp.bfloat16), w2_ref[...],
                preferred_element_type=jnp.float32) + b2_ref[...]
    y = jnp.dot(t.astype(jnp.bfloat16), wf_ref[...],
                preferred_element_type=jnp.float32) + bf_ref[...]
    o_ref[...] = y.astype(o_ref.dtype)


def head_pallas(h_last, w1, b1, w2, b2, wf, bf, *, tile_b=256):
    """Fused feed_forward + fc applied to the last hidden state only."""
    B, H = h_last.shape
    F = w1.shape[1]
    O = wf.shape[1]
    bt = _pick_tile(B, tile_b)
    return pl.pallas_call(
        _head_kernel,
        grid=(pl.cdiv(B, bt),),
        out_shape=jax.ShapeDtypeStruct((B, O), jnp.float32),
        in_specs=[pl.BlockSpec((bt, H), lambda i: (i, 0)),
                  pl.BlockSpec((H, F), lambda i: (0, 0)),
                  pl.BlockSpec((1, F), lambda i: (0, 0)),
                  pl.BlockSpec((F, H), lambda i: (0, 0)),
                  pl.BlockSpec((1, H), lambda i: (0, 0)),
                  pl.BlockSpec((H, O), lambda i: (0, 0)),
                  pl.BlockSpec((1, O), lambda i: (0, 0))],
        out_specs=pl.BlockSpec((bt, O), lambda i: (i, 0)),
        compiler_params=pltpu.CompilerParams(
            dimension_semantics=("parallel",),
            vmem_limit_bytes=_vmem_limit_bytes()),
    )(jnp.asarray(h_last, jnp.float32),
      jnp.asarray(w1, jnp.bfloat16), jnp.asarray(b1, jnp.float32).reshape(1, F),
      jnp.asarray(w2, jnp.bfloat16), jnp.asarray(b2, jnp.float32).reshape(1, H),
      jnp.asarray(wf, jnp.bfloat16), jnp.asarray(bf, jnp.float32).reshape(1, O))


# ---------------------------------------------------------------------------
# Model forward (matches BBoxLSTMModel.forward)
# ---------------------------------------------------------------------------
def bbox_lstm_forward(params, x):
    h = jnp.asarray(x, jnp.float32)
    n_layers = len(params['lstm'])
    for idx, lp in enumerate(params['lstm']):               # stacked LSTM layers
        last = (idx == n_layers - 1)
        h = lstm_layer_pallas(h, lp['w_ih'], lp['w_hh'], lp['b'], last_only=last)
    # feed_forward is timestep-local and fc only reads out[:, -1, :], so the
    # fused head on h_{L-1} is exactly equivalent to feed_forward(full seq)
    # followed by the [:, -1, :] slice.
    return head_pallas(h, params['ff1_w'], params['ff1_b'],
                       params['ff2_w'], params['ff2_b'],
                       params['fc_w'], params['fc_b'])       # f32, like .float()


# ---------------------------------------------------------------------------
# Deterministic torch-style parameter init (PyTorch gate order i, f, g, o)
# ---------------------------------------------------------------------------
def _uniform(key, shape, scale):
    return jax.random.uniform(key, shape, jnp.float32, -scale, scale)


def init_params(key, input_size, hidden_size, output_size, num_layers=1):
    H = hidden_size
    keys = jax.random.split(key, num_layers + 3)
    k_lstm = 1.0 / math.sqrt(H)
    layers = []
    for l in range(num_layers):
        kk = jax.random.split(keys[l], 4)
        in_dim = input_size if l == 0 else H
        w_ih = _uniform(kk[0], (in_dim, 4 * H), k_lstm)      # (in, 4H) = W_ih^T
        w_hh = _uniform(kk[1], (H, 4 * H), k_lstm)           # (H, 4H)  = W_hh^T
        b_ih = _uniform(kk[2], (4 * H,), k_lstm)
        b_hh = _uniform(kk[3], (4 * H,), k_lstm)
        layers.append(dict(w_ih=w_ih, w_hh=w_hh, b=b_ih + b_hh))

    k_ff1 = jax.random.split(keys[num_layers], 2)
    k_ff2 = jax.random.split(keys[num_layers + 1], 2)
    k_fc = jax.random.split(keys[num_layers + 2], 2)
    s1 = 1.0 / math.sqrt(H)
    s2 = 1.0 / math.sqrt(4 * H)
    return dict(
        lstm=layers,
        ff1_w=_uniform(k_ff1[0], (H, 4 * H), s1), ff1_b=_uniform(k_ff1[1], (4 * H,), s1),
        ff2_w=_uniform(k_ff2[0], (4 * H, H), s2), ff2_b=_uniform(k_ff2[1], (H,), s2),
        fc_w=_uniform(k_fc[0], (H, output_size), s1), fc_b=_uniform(k_fc[1], (output_size,), s1),
    )


# ---------------------------------------------------------------------------
# Pure-JAX reference (mirrors the PyTorch forward literally) for validation
# ---------------------------------------------------------------------------
def _reference_forward(params, x):
    B, L, _ = x.shape
    hp = lax.Precision.HIGHEST
    h_seq = x
    for lp in params['lstm']:
        H = lp['w_hh'].shape[0]
        xg = jnp.einsum('bli,ig->blg', h_seq, lp['w_ih'], precision=hp) + lp['b']

        def step(carry, xg_t, _lp=lp, _H=H):
            h, c = carry
            g = xg_t + jnp.dot(h, _lp['w_hh'], precision=hp)
            i = jax.nn.sigmoid(g[:, :_H])
            f = jax.nn.sigmoid(g[:, _H:2 * _H])
            gc = jnp.tanh(g[:, 2 * _H:3 * _H])
            o = jax.nn.sigmoid(g[:, 3 * _H:])
            c = f * c + i * gc
            h = o * jnp.tanh(c)
            return (h, c), h

        init = (jnp.zeros((B, H), jnp.float32), jnp.zeros((B, H), jnp.float32))
        _, hs = lax.scan(step, init, jnp.swapaxes(xg, 0, 1))
        h_seq = jnp.swapaxes(hs, 0, 1)

    t = jnp.einsum('blh,hf->blf', h_seq, params['ff1_w'], precision=hp) + params['ff1_b']
    t = jax.nn.gelu(t, approximate=False)
    t = jnp.einsum('blf,fh->blh', t, params['ff2_w'], precision=hp) + params['ff2_b']
    return jnp.dot(t[:, -1, :], params['fc_w'], precision=hp) + params['fc_b']


# ---------------------------------------------------------------------------
if __name__ == "__main__":
    key = jax.random.PRNGKey(0)
    B, L = 2, 8
    input_size, hidden_size, output_size, num_layers = 8, 32, 4, 1

    kx, kp = jax.random.split(key)
    x = jax.random.normal(kx, (B, L, input_size), jnp.float32)
    params = init_params(kp, input_size, hidden_size, output_size, num_layers)

    fwd = jax.jit(bbox_lstm_forward)
    out = jax.block_until_ready(fwd(params, x))

    assert out.shape == (B, output_size)
    assert out.dtype == jnp.float32
    assert bool(jnp.all(jnp.isfinite(out)))

    # Validate against a literal (full-sequence feed_forward) pure-JAX reference.
    ref = _reference_forward(params, x)
    max_err = float(jnp.max(jnp.abs(out - ref)))
    assert max_err < 5e-2, f"max abs error {max_err}"

    print("KERNEL_OK")
</pallas_src>

<mosaic_0001>
module attributes {stable_mosaic.version = 11 : i64} {
  func.func @_lstm_last_kernel(%arg0: i32, %arg1: memref<2x8x8xf32, #tpu.memory_space<vmem>>, %arg2: memref<8x128xbf16, #tpu.memory_space<vmem>>, %arg3: memref<1x128xf32, #tpu.memory_space<vmem>>, %arg4: memref<32x128xbf16, #tpu.memory_space<vmem>>, %arg5: memref<2x32xf32, #tpu.memory_space<vmem>>, %arg6: memref<2x32xf32, #tpu.memory_space<vmem>>, %arg7: memref<2x32xf32, #tpu.memory_space<vmem>>) attributes {dimension_semantics = [#tpu.dimension_semantics<parallel>], iteration_bounds = array<i64: 1>, scalar_prefetch = 0 : i64, scratch_operands = 2 : i64, tpu.core_type = #tpu.core_type<tc>, window_params = [{transform_indices = @transform_0, window_bounds = array<i64: 2, 8, 8>}, {pipeline_mode = #tpu.pipeline_mode<synchronous>, transform_indices = @transform_1, window_bounds = array<i64: 8, 128>}, {pipeline_mode = #tpu.pipeline_mode<synchronous>, transform_indices = @transform_2, window_bounds = array<i64: 1, 128>}, {pipeline_mode = #tpu.pipeline_mode<synchronous>, transform_indices = @transform_3, window_bounds = array<i64: 32, 128>}, {transform_indices = @transform_4, window_bounds = array<i64: 2, 32>}]} {
    %cst = arith.constant 0.000000e+00 : f32
    %0 = vector.broadcast %cst : f32 to vector<2x32xf32>
    %c0 = arith.constant 0 : index
    %c0_0 = arith.constant 0 : index
    %1 = vector.load %arg6[%c0, %c0_0] : memref<2x32xf32, #tpu.memory_space<vmem>>, vector<2x32xf32>
    tpu.vector_store %arg6[%c0, %c0_0], %0 {strides = array<i32>} : memref<2x32xf32, #tpu.memory_space<vmem>>, vector<2x32xf32>,
    %cst_1 = arith.constant 0.000000e+00 : f32
    %2 = vector.broadcast %cst_1 : f32 to vector<2x32xf32>
    %c0_2 = arith.constant 0 : index
    %c0_3 = arith.constant 0 : index
    %3 = vector.load %arg7[%c0_2, %c0_3] : memref<2x32xf32, #tpu.memory_space<vmem>>, vector<2x32xf32>
    tpu.vector_store %arg7[%c0_2, %c0_3], %2 {strides = array<i32>} : memref<2x32xf32, #tpu.memory_space<vmem>>, vector<2x32xf32>,
    %c0_i32 = arith.constant 0 : i32
    %c0_4 = arith.constant 0 : index
    %c0_5 = arith.constant 0 : index
    %4 = vector.load %arg6[%c0_4, %c0_5] : memref<2x32xf32, #tpu.memory_space<vmem>>, vector<2x32xf32>
    %5 = arith.truncf %4 : vector<2x32xf32> to vector<2x32xbf16>
    %c0_6 = arith.constant 0 : index
    %c0_7 = arith.constant 0 : index
    %6 = vector.load %arg4[%c0_6, %c0_7] : memref<32x128xbf16, #tpu.memory_space<vmem>>, vector<32x128xbf16>
    %cst_8 = arith.constant dense<0.000000e+00> : vector<2x128xf32>
    %7 = tpu.matmul %5, %6, %cst_8 {dimension_numbers = #tpu.dot_dimension_numbers<[1], [0], [0], [1], [0, 0, 1, 1], [], []>} : vector<2x32xbf16>, vector<32x128xbf16>, vector<2x128xf32> -> vector<2x128xf32>
    %c0_9 = arith.constant 0 : index
    %8 = arith.index_cast %c0_i32 : i32 to index
    %c0_10 = arith.constant 0 : index
    %9 = vector.load %arg1[%c0_9, %8, %c0_10] : memref<2x8x8xf32, #tpu.memory_space<vmem>>, vector<2x1x8xf32>
    %10 = vector.shape_cast %9 : vector<2x1x8xf32> to vector<2x8xf32>
    %11 = arith.truncf %10 : vector<2x8xf32> to vector<2x8xbf16>
    %c0_11 = arith.constant 0 : index
    %c0_12 = arith.constant 0 : index
    %12 = vector.load %arg2[%c0_11, %c0_12] : memref<8x128xbf16, #tpu.memory_space<vmem>>, vector<8x128xbf16>
    %cst_13 = arith.constant dense<0.000000e+00> : vector<2x128xf32>
    %13 = tpu.matmul %11, %12, %cst_13 {dimension_numbers = #tpu.dot_dimension_numbers<[1], [0], [0], [1], [0, 0, 1, 1], [], []>} : vector<2x8xbf16>, vector<8x128xbf16>, vector<2x128xf32> -> vector<2x128xf32>
    %14 = arith.addf %7, %13 : vector<2x128xf32>
    %c0_14 = arith.constant 0 : index
    %c0_15 = arith.constant 0 : index
    %15 = vector.load %arg3[%c0_14, %c0_15] : memref<1x128xf32, #tpu.memory_space<vmem>>, vector<1x128xf32>
    %16 = vector.broadcast %15 : vector<1x128xf32> to vector<2x128xf32>
    %17 = arith.addf %14, %16 : vector<2x128xf32>
    %18 = vector.extract_strided_slice %17 {offsets = [0, 0], sizes = [2, 96], strides = [1, 1]} : vector<2x128xf32> to vector<2x96xf32>
    %19 = arith.negf %18 : vector<2x96xf32>
    %20 = math.exp %19 : vector<2x96xf32>
    %cst_16 = arith.constant 1.000000e+00 : f32
    %21 = vector.broadcast %cst_16 : f32 to vector<2x96xf32>
    %22 = arith.addf %21, %20 : vector<2x96xf32>
    %23 = arith.divf %21, %22 : vector<2x96xf32>
    %24 = vector.extract_strided_slice %23 {offsets = [0, 0], sizes = [2, 32], strides = [1, 1]} : vector<2x96xf32> to vector<2x32xf32>
    %25 = vector.extract_strided_slice %23 {offsets = [0, 32], sizes = [2, 32], strides = [1, 1]} : vector<2x96xf32> to vector<2x32xf32>
    %26 = vector.extract_strided_slice %23 {offsets = [0, 64], sizes = [2, 32], strides = [1, 1]} : vector<2x96xf32> to vector<2x32xf32>
    %27 = vector.extract_strided_slice %17 {offsets = [0, 96], sizes = [2, 32], strides = [1, 1]} : vector<2x128xf32> to vector<2x32xf32>
    %28 = math.tanh %27 : vector<2x32xf32>
    %c0_17 = arith.constant 0 : index
    %c0_18 = arith.constant 0 : index
    %29 = vector.load %arg7[%c0_17, %c0_18] : memref<2x32xf32, #tpu.memory_space<vmem>>, vector<2x32xf32>
    %30 = arith.mulf %25, %29 : vector<2x32xf32>
    %31 = arith.mulf %24, %28 : vector<2x32xf32>
    %32 = arith.addf %30, %31 : vector<2x32xf32>
    %33 = math.tanh %32 : vector<2x32xf32>
    %34 = arith.mulf %26, %33 : vector<2x32xf32>
    %c0_19 = arith.constant 0 : index
    %c0_20 = arith.constant 0 : index
    %35 = vector.load %arg7[%c0_19, %c0_20] : memref<2x32xf32, #tpu.memory_space<vmem>>, vector<2x32xf32>
    tpu.vector_store %arg7[%c0_19, %c0_20], %32 {strides = array<i32>} : memref<2x32xf32, #tpu.memory_space<vmem>>, vector<2x32xf32>,
    %c0_21 = arith.constant 0 : index
    %c0_22 = arith.constant 0 : index
    %36 = vector.load %arg6[%c0_21, %c0_22] : memref<2x32xf32, #tpu.memory_space<vmem>>, vector<2x32xf32>
    tpu.vector_store %arg6[%c0_21, %c0_22], %34 {strides = array<i32>} : memref<2x32xf32, #tpu.memory_space<vmem>>, vector<2x32xf32>,
    %c1_i32 = arith.constant 1 : i32
    %c0_23 = arith.constant 0 : index
    %c0_24 = arith.constant 0 : index
    %37 = vector.load %arg6[%c0_23, %c0_24] : memref<2x32xf32, #tpu.memory_space<vmem>>, vector<2x32xf32>
    %38 = arith.truncf %37 : vector<2x32xf32> to vector<2x32xbf16>
    %c0_25 = arith.constant 0 : index
    %c0_26 = arith.constant 0 : index
    %39 = vector.load %arg4[%c0_25, %c0_26] : memref<32x128xbf16, #tpu.memory_space<vmem>>, vector<32x128xbf16>
    %cst_27 = arith.constant dense<0.000000e+00> : vector<2x128xf32>
    %40 = tpu.matmul %38, %39, %cst_27 {dimension_numbers = #tpu.dot_dimension_numbers<[1], [0], [0], [1], [0, 0, 1, 1], [], []>} : vector<2x32xbf16>, vector<32x128xbf16>, vector<2x128xf32> -> vector<2x128xf32>
    %c0_28 = arith.constant 0 : index
    %41 = arith.index_cast %c1_i32 : i32 to index
    %c0_29 = arith.constant 0 : index
    %42 = vector.load %arg1[%c0_28, %41, %c0_29] : memref<2x8x8xf32, #tpu.memory_space<vmem>>, vector<2x1x8xf32>
    %43 = vector.shape_cast %42 : vector<2x1x8xf32> to vector<2x8xf32>
    %44 = arith.truncf %43 : vector<2x8xf32> to vector<2x8xbf16>
    %c0_30 = arith.constant 0 : index
    %c0_31 = arith.constant 0 : index
    %45 = vector.load %arg2[%c0_30, %c0_31] : memref<8x128xbf16, #tpu.memory_space<vmem>>, vector<8x128xbf16>
    %cst_32 = arith.constant dense<0.000000e+00> : vector<2x128xf32>
    %46 = tpu.matmul %44, %45, %cst_32 {dimension_numbers = #tpu.dot_dimension_numbers<[1], [0], [0], [1], [0, 0, 1, 1], [], []>} : vector<2x8xbf16>, vector<8x128xbf16>, vector<2x128xf32> -> vector<2x128xf32>
    %47 = arith.addf %40, %46 : vector<2x128xf32>
    %c0_33 = arith.constant 0 : index
    %c0_34 = arith.constant 0 : index
    %48 = vector.load %arg3[%c0_33, %c0_34] : memref<1x128xf32, #tpu.memory_space<vmem>>, vector<1x128xf32>
    %49 = vector.broadcast %48 : vector<1x128xf32> to vector<2x128xf32>
    %50 = arith.addf %47, %49 : vector<2x128xf32>
    %51 = vector.extract_strided_slice %50 {offsets = [0, 0], sizes = [2, 96], strides = [1, 1]} : vector<2x128xf32> to vector<2x96xf32>
    %52 = arith.negf %51 : vector<2x96xf32>
    %53 = math.exp %52 : vector<2x96xf32>
    %cst_35 = arith.constant 1.000000e+00 : f32
    %54 = vector.broadcast %cst_35 : f32 to vector<2x96xf32>
    %55 = arith.addf %54, %53 : vector<2x96xf32>
    %56 = arith.divf %54, %55 : vector<2x96xf32>
    %57 = vector.extract_strided_slice %56 {offsets = [0, 0], sizes = [2, 32], strides = [1, 1]} : vector<2x96xf32> to vector<2x32xf32>
    %58 = vector.extract_strided_slice %56 {offsets = [0, 32], sizes = [2, 32], strides = [1, 1]} : vector<2x96xf32> to vector<2x32xf32>
    %59 = vector.extract_strided_slice %56 {offsets = [0, 64], sizes = [2, 32], strides = [1, 1]} : vector<2x96xf32> to vector<2x32xf32>
    %60 = vector.extract_strided_slice %50 {offsets = [0, 96], sizes = [2, 32], strides = [1, 1]} : vector<2x128xf32> to vector<2x32xf32>
    %61 = math.tanh %60 : vector<2x32xf32>
    %c0_36 = arith.constant 0 : index
    %c0_37 = arith.constant 0 : index
    %62 = vector.load %arg7[%c0_36, %c0_37] : memref<2x32xf32, #tpu.memory_space<vmem>>, vector<2x32xf32>
    %63 = arith.mulf %58, %62 : vector<2x32xf32>
    %64 = arith.mulf %57, %61 : vector<2x32xf32>
    %65 = arith.addf %63, %64 : vector<2x32xf32>
    %66 = math.tanh %65 : vector<2x32xf32>
    %67 = arith.mulf %59, %66 : vector<2x32xf32>
    %c0_38 = arith.constant 0 : index
    %c0_39 = arith.constant 0 : index
    %68 = vector.load %arg7[%c0_38, %c0_39] : memref<2x32xf32, #tpu.memory_space<vmem>>, vector<2x32xf32>
    tpu.vector_store %arg7[%c0_38, %c0_39], %65 {strides = array<i32>} : memref<2x32xf32, #tpu.memory_space<vmem>>, vector<2x32xf32>,
    %c0_40 = arith.constant 0 : index
    %c0_41 = arith.constant 0 : index
    %69 = vector.load %arg6[%c0_40, %c0_41] : memref<2x32xf32, #tpu.memory_space<vmem>>, vector<2x32xf32>
    tpu.vector_store %arg6[%c0_40, %c0_41], %67 {strides = array<i32>} : memref<2x32xf32, #tpu.memory_space<vmem>>, vector<2x32xf32>,
    %c2_i32 = arith.constant 2 : i32
    %c0_42 = arith.constant 0 : index
    %c0_43 = arith.constant 0 : index
    %70 = vector.load %arg6[%c0_42, %c0_43] : memref<2x32xf32, #tpu.memory_space<vmem>>, vector<2x32xf32>
    %71 = arith.truncf %70 : vector<2x32xf32> to vector<2x32xbf16>
    %c0_44 = arith.constant 0 : index
    %c0_45 = arith.constant 0 : index
    %72 = vector.load %arg4[%c0_44, %c0_45] : memref<32x128xbf16, #tpu.memory_space<vmem>>, vector<32x128xbf16>
    %cst_46 = arith.constant dense<0.000000e+00> : vector<2x128xf32>
    %73 = tpu.matmul %71, %72, %cst_46 {dimension_numbers = #tpu.dot_dimension_numbers<[1], [0], [0], [1], [0, 0, 1, 1], [], []>} : vector<2x32xbf16>, vector<32x128xbf16>, vector<2x128xf32> -> vector<2x128xf32>
    %c0_47 = arith.constant 0 : index
    %74 = arith.index_cast %c2_i32 : i32 to index
    %c0_48 = arith.constant 0 : index
    %75 = vector.load %arg1[%c0_47, %74, %c0_48] : memref<2x8x8xf32, #tpu.memory_space<vmem>>, vector<2x1x8xf32>
    %76 = vector.shape_cast %75 : vector<2x1x8xf32> to vector<2x8xf32>
    %77 = arith.truncf %76 : vector<2x8xf32> to vector<2x8xbf16>
    %c0_49 = arith.constant 0 : index
    %c0_50 = arith.constant 0 : index
    %78 = vector.load %arg2[%c0_49, %c0_50] : memref<8x128xbf16, #tpu.memory_space<vmem>>, vector<8x128xbf16>
    %cst_51 = arith.constant dense<0.000000e+00> : vector<2x128xf32>
    %79 = tpu.matmul %77, %78, %cst_51 {dimension_numbers = #tpu.dot_dimension_numbers<[1], [0], [0], [1], [0, 0, 1, 1], [], []>} : vector<2x8xbf16>, vector<8x128xbf16>, vector<2x128xf32> -> vector<2x128xf32>
    %80 = arith.addf %73, %79 : vector<2x128xf32>
    %c0_52 = arith.constant 0 : index
    %c0_53 = arith.constant 0 : index
    %81 = vector.load %arg3[%c0_52, %c0_53] : memref<1x128xf32, #tpu.memory_space<vmem>>, vector<1x128xf32>
    %82 = vector.broadcast %81 : vector<1x128xf32> to vector<2x128xf32>
    %83 = arith.addf %80, %82 : vector<2x128xf32>
    %84 = vector.extract_strided_slice %83 {offsets = [0, 0], sizes = [2, 96], strides = [1, 1]} : vector<2x128xf32> to vector<2x96xf32>
    %85 = arith.negf %84 : vector<2x96xf32>
    %86 = math.exp %85 : vector<2x96xf32>
    %cst_54 = arith.constant 1.000000e+00 : f32
    %87 = vector.broadcast %cst_54 : f32 to vector<2x96xf32>
    %88 = arith.addf %87, %86 : vector<2x96xf32>
    %89 = arith.divf %87, %88 : vector<2x96xf32>
    %90 = vector.extract_strided_slice %89 {offsets = [0, 0], sizes = [2, 32], strides = [1, 1]} : vector<2x96xf32> to vector<2x32xf32>
    %91 = vector.extract_strided_slice %89 {offsets = [0, 32], sizes = [2, 32], strides = [1, 1]} : vector<2x96xf32> to vector<2x32xf32>
    %92 = vector.extract_strided_slice %89 {offsets = [0, 64], sizes = [2, 32], strides = [1, 1]} : vector<2x96xf32> to vector<2x32xf32>
    %93 = vector.extract_strided_slice %83 {offsets = [0, 96], sizes = [2, 32], strides = [1, 1]} : vector<2x128xf32> to vector<2x32xf32>
    %94 = math.tanh %93 : vector<2x32xf32>
    %c0_55 = arith.constant 0 : index
    %c0_56 = arith.constant 0 : index
    %95 = vector.load %arg7[%c0_55, %c0_56] : memref<2x32xf32, #tpu.memory_space<vmem>>, vector<2x32xf32>
    %96 = arith.mulf %91, %95 : vector<2x32xf32>
    %97 = arith.mulf %90, %94 : vector<2x32xf32>
    %98 = arith.addf %96, %97 : vector<2x32xf32>
    %99 = math.tanh %98 : vector<2x32xf32>
    %100 = arith.mulf %92, %99 : vector<2x32xf32>
    %c0_57 = arith.constant 0 : index
    %c0_58 = arith.constant 0 : index
    %101 = vector.load %arg7[%c0_57, %c0_58] : memref<2x32xf32, #tpu.memory_space<vmem>>, vector<2x32xf32>
    tpu.vector_store %arg7[%c0_57, %c0_58], %98 {strides = array<i32>} : memref<2x32xf32, #tpu.memory_space<vmem>>, vector<2x32xf32>,
    %c0_59 = arith.constant 0 : index
    %c0_60 = arith.constant 0 : index
    %102 = vector.load %arg6[%c0_59, %c0_60] : memref<2x32xf32, #tpu.memory_space<vmem>>, vector<2x32xf32>
    tpu.vector_store %arg6[%c0_59, %c0_60], %100 {strides = array<i32>} : memref<2x32xf32, #tpu.memory_space<vmem>>, vector<2x32xf32>,
    %c3_i32 = arith.constant 3 : i32
    %c0_61 = arith.constant 0 : index
    %c0_62 = arith.constant 0 : index
    %103 = vector.load %arg6[%c0_61, %c0_62] : memref<2x32xf32, #tpu.memory_space<vmem>>, vector<2x32xf32>
    %104 = arith.truncf %103 : vector<2x32xf32> to vector<2x32xbf16>
    %c0_63 = arith.constant 0 : index
    %c0_64 = arith.constant 0 : index
    %105 = vector.load %arg4[%c0_63, %c0_64] : memref<32x128xbf16, #tpu.memory_space<vmem>>, vector<32x128xbf16>
    %cst_65 = arith.constant dense<0.000000e+00> : vector<2x128xf32>
    %106 = tpu.matmul %104, %105, %cst_65 {dimension_numbers = #tpu.dot_dimension_numbers<[1], [0], [0], [1], [0, 0, 1, 1], [], []>} : vector<2x32xbf16>, vector<32x128xbf16>, vector<2x128xf32> -> vector<2x128xf32>
    %c0_66 = arith.constant 0 : index
    %107 = arith.index_cast %c3_i32 : i32 to index
    %c0_67 = arith.constant 0 : index
    %108 = vector.load %arg1[%c0_66, %107, %c0_67] : memref<2x8x8xf32, #tpu.memory_space<vmem>>, vector<2x1x8xf32>
    %109 = vector.shape_cast %108 : vector<2x1x8xf32> to vector<2x8xf32>
    %110 = arith.truncf %109 : vector<2x8xf32> to vector<2x8xbf16>
    %c0_68 = arith.constant 0 : index
    %c0_69 = arith.constant 0 : index
    %111 = vector.load %arg2[%c0_68, %c0_69] : memref<8x128xbf16, #tpu.memory_space<vmem>>, vector<8x128xbf16>
    %cst_70 = arith.constant dense<0.000000e+00> : vector<2x128xf32>
    %112 = tpu.matmul %110, %111, %cst_70 {dimension_numbers = #tpu.dot_dimension_numbers<[1], [0], [0], [1], [0, 0, 1, 1], [], []>} : vector<2x8xbf16>, vector<8x128xbf16>, vector<2x128xf32> -> vector<2x128xf32>
    %113 = arith.addf %106, %112 : vector<2x128xf32>
    %c0_71 = arith.constant 0 : index
    %c0_72 = arith.constant 0 : index
    %114 = vector.load %arg3[%c0_71, %c0_72] : memref<1x128xf32, #tpu.memory_space<vmem>>, vector<1x128xf32>
    %115 = vector.broadcast %114 : vector<1x128xf32> to vector<2x128xf32>
    %116 = arith.addf %113, %115 : vector<2x128xf32>
    %117 = vector.extract_strided_slice %116 {offsets = [0, 0], sizes = [2, 96], strides = [1, 1]} : vector<2x128xf32> to vector<2x96xf32>
    %118 = arith.negf %117 : vector<2x96xf32>
    %119 = math.exp %118 : vector<2x96xf32>
    %cst_73 = arith.constant 1.000000e+00 : f32
    %120 = vector.broadcast %cst_73 : f32 to vector<2x96xf32>
    %121 = arith.addf %120, %119 : vector<2x96xf32>
    %122 = arith.divf %120, %121 : vector<2x96xf32>
    %123 = vector.extract_strided_slice %122 {offsets = [0, 0], sizes = [2, 32], strides = [1, 1]} : vector<2x96xf32> to vector<2x32xf32>
    %124 = vector.extract_strided_slice %122 {offsets = [0, 32], sizes = [2, 32], strides = [1, 1]} : vector<2x96xf32> to vector<2x32xf32>
    %125 = vector.extract_strided_slice %122 {offsets = [0, 64], sizes = [2, 32], strides = [1, 1]} : vector<2x96xf32> to vector<2x32xf32>
    %126 = vector.extract_strided_slice %116 {offsets = [0, 96], sizes = [2, 32], strides = [1, 1]} : vector<2x128xf32> to vector<2x32xf32>
    %127 = math.tanh %126 : vector<2x32xf32>
    %c0_74 = arith.constant 0 : index
    %c0_75 = arith.constant 0 : index
    %128 = vector.load %arg7[%c0_74, %c0_75] : memref<2x32xf32, #tpu.memory_space<vmem>>, vector<2x32xf32>
    %129 = arith.mulf %124, %128 : vector<2x32xf32>
    %130 = arith.mulf %123, %127 : vector<2x32xf32>
    %131 = arith.addf %129, %130 : vector<2x32xf32>
    %132 = math.tanh %131 : vector<2x32xf32>
    %133 = arith.mulf %125, %132 : vector<2x32xf32>
    %c0_76 = arith.constant 0 : index
    %c0_77 = arith.constant 0 : index
    %134 = vector.load %arg7[%c0_76, %c0_77] : memref<2x32xf32, #tpu.memory_space<vmem>>, vector<2x32xf32>
    tpu.vector_store %arg7[%c0_76, %c0_77], %131 {strides = array<i32>} : memref<2x32xf32, #tpu.memory_space<vmem>>, vector<2x32xf32>,
    %c0_78 = arith.constant 0 : index
    %c0_79 = arith.constant 0 : index
    %135 = vector.load %arg6[%c0_78, %c0_79] : memref<2x32xf32, #tpu.memory_space<vmem>>, vector<2x32xf32>
    tpu.vector_store %arg6[%c0_78, %c0_79], %133 {strides = array<i32>} : memref<2x32xf32, #tpu.memory_space<vmem>>, vector<2x32xf32>,
    %c4_i32 = arith.constant 4 : i32
    %c0_80 = arith.constant 0 : index
    %c0_81 = arith.constant 0 : index
    %136 = vector.load %arg6[%c0_80, %c0_81] : memref<2x32xf32, #tpu.memory_space<vmem>>, vector<2x32xf32>
    %137 = arith.truncf %136 : vector<2x32xf32> to vector<2x32xbf16>
    %c0_82 = arith.constant 0 : index
    %c0_83 = arith.constant 0 : index
    %138 = vector.load %arg4[%c0_82, %c0_83] : memref<32x128xbf16, #tpu.memory_space<vmem>>, vector<32x128xbf16>
    %cst_84 = arith.constant dense<0.000000e+00> : vector<2x128xf32>
    %139 = tpu.matmul %137, %138, %cst_84 {dimension_numbers = #tpu.dot_dimension_numbers<[1], [0], [0], [1], [0, 0, 1, 1], [], []>} : vector<2x32xbf16>, vector<32x128xbf16>, vector<2x128xf32> -> vector<2x128xf32>
    %c0_85 = arith.constant 0 : index
    %140 = arith.index_cast %c4_i32 : i32 to index
    %c0_86 = arith.constant 0 : index
    %141 = vector.load %arg1[%c0_85, %140, %c0_86] : memref<2x8x8xf32, #tpu.memory_space<vmem>>, vector<2x1x8xf32>
    %142 = vector.shape_cast %141 : vector<2x1x8xf32> to vector<2x8xf32>
    %143 = arith.truncf %142 : vector<2x8xf32> to vector<2x8xbf16>
    %c0_87 = arith.constant 0 : index
    %c0_88 = arith.constant 0 : index
    %144 = vector.load %arg2[%c0_87, %c0_88] : memref<8x128xbf16, #tpu.memory_space<vmem>>, vector<8x128xbf16>
    %cst_89 = arith.constant dense<0.000000e+00> : vector<2x128xf32>
    %145 = tpu.matmul %143, %144, %cst_89 {dimension_numbers = #tpu.dot_dimension_numbers<[1], [0], [0], [1], [0, 0, 1, 1], [], []>} : vector<2x8xbf16>, vector<8x128xbf16>, vector<2x128xf32> -> vector<2x128xf32>
    %146 = arith.addf %139, %145 : vector<2x128xf32>
    %c0_90 = arith.constant 0 : index
    %c0_91 = arith.constant 0 : index
    %147 = vector.load %arg3[%c0_90, %c0_91] : memref<1x128xf32, #tpu.memory_space<vmem>>, vector<1x128xf32>
    %148 = vector.broadcast %147 : vector<1x128xf32> to vector<2x128xf32>
    %149 = arith.addf %146, %148 : vector<2x128xf32>
    %150 = vector.extract_strided_slice %149 {offsets = [0, 0], sizes = [2, 96], strides = [1, 1]} : vector<2x128xf32> to vector<2x96xf32>
    %151 = arith.negf %150 : vector<2x96xf32>
    %152 = math.exp %151 : vector<2x96xf32>
    %cst_92 = arith.constant 1.000000e+00 : f32
    %153 = vector.broadcast %cst_92 : f32 to vector<2x96xf32>
    %154 = arith.addf %153, %152 : vector<2x96xf32>
    %155 = arith.divf %153, %154 : vector<2x96xf32>
    %156 = vector.extract_strided_slice %155 {offsets = [0, 0], sizes = [2, 32], strides = [1, 1]} : vector<2x96xf32> to vector<2x32xf32>
    %157 = vector.extract_strided_slice %155 {offsets = [0, 32], sizes = [2, 32], strides = [1, 1]} : vector<2x96xf32> to vector<2x32xf32>
    %158 = vector.extract_strided_slice %155 {offsets = [0, 64], sizes = [2, 32], strides = [1, 1]} : vector<2x96xf32> to vector<2x32xf32>
    %159 = vector.extract_strided_slice %149 {offsets = [0, 96], sizes = [2, 32], strides = [1, 1]} : vector<2x128xf32> to vector<2x32xf32>
    %160 = math.tanh %159 : vector<2x32xf32>
    %c0_93 = arith.constant 0 : index
    %c0_94 = arith.constant 0 : index
    %161 = vector.load %arg7[%c0_93, %c0_94] : memref<2x32xf32, #tpu.memory_space<vmem>>, vector<2x32xf32>
    %162 = arith.mulf %157, %161 : vector<2x32xf32>
    %163 = arith.mulf %156, %160 : vector<2x32xf32>
    %164 = arith.addf %162, %163 : vector<2x32xf32>
    %165 = math.tanh %164 : vector<2x32xf32>
    %166 = arith.mulf %158, %165 : vector<2x32xf32>
    %c0_95 = arith.constant 0 : index
    %c0_96 = arith.constant 0 : index
    %167 = vector.load %arg7[%c0_95, %c0_96] : memref<2x32xf32, #tpu.memory_space<vmem>>, vector<2x32xf32>
    tpu.vector_store %arg7[%c0_95, %c0_96], %164 {strides = array<i32>} : memref<2x32xf32, #tpu.memory_space<vmem>>, vector<2x32xf32>,
    %c0_97 = arith.constant 0 : index
    %c0_98 = arith.constant 0 : index
    %168 = vector.load %arg6[%c0_97, %c0_98] : memref<2x32xf32, #tpu.memory_space<vmem>>, vector<2x32xf32>
    tpu.vector_store %arg6[%c0_97, %c0_98], %166 {strides = array<i32>} : memref<2x32xf32, #tpu.memory_space<vmem>>, vector<2x32xf32>,
    %c5_i32 = arith.constant 5 : i32
    %c0_99 = arith.constant 0 : index
    %c0_100 = arith.constant 0 : index
    %169 = vector.load %arg6[%c0_99, %c0_100] : memref<2x32xf32, #tpu.memory_space<vmem>>, vector<2x32xf32>
    %170 = arith.truncf %169 : vector<2x32xf32> to vector<2x32xbf16>
    %c0_101 = arith.constant 0 : index
    %c0_102 = arith.constant 0 : index
    %171 = vector.load %arg4[%c0_101, %c0_102] : memref<32x128xbf16, #tpu.memory_space<vmem>>, vector<32x128xbf16>
    %cst_103 = arith.constant dense<0.000000e+00> : vector<2x128xf32>
    %172 = tpu.matmul %170, %171, %cst_103 {dimension_numbers = #tpu.dot_dimension_numbers<[1], [0], [0], [1], [0, 0, 1, 1], [], []>} : vector<2x32xbf16>, vector<32x128xbf16>, vector<2x128xf32> -> vector<2x128xf32>
    %c0_104 = arith.constant 0 : index
    %173 = arith.index_cast %c5_i32 : i32 to index
    %c0_105 = arith.constant 0 : index
    %174 = vector.load %arg1[%c0_104, %173, %c0_105] : memref<2x8x8xf32, #tpu.memory_space<vmem>>, vector<2x1x8xf32>
    %175 = vector.shape_cast %174 : vector<2x1x8xf32> to vector<2x8xf32>
    %176 = arith.truncf %175 : vector<2x8xf32> to vector<2x8xbf16>
    %c0_106 = arith.constant 0 : index
    %c0_107 = arith.constant 0 : index
    %177 = vector.load %arg2[%c0_106, %c0_107] : memref<8x128xbf16, #tpu.memory_space<vmem>>, vector<8x128xbf16>
    %cst_108 = arith.constant dense<0.000000e+00> : vector<2x128xf32>
    %178 = tpu.matmul %176, %177, %cst_108 {dimension_numbers = #tpu.dot_dimension_numbers<[1], [0], [0], [1], [0, 0, 1, 1], [], []>} : vector<2x8xbf16>, vector<8x128xbf16>, vector<2x128xf32> -> vector<2x128xf32>
    %179 = arith.addf %172, %178 : vector<2x128xf32>
    %c0_109 = arith.constant 0 : index
    %c0_110 = arith.constant 0 : index
    %180 = vector.load %arg3[%c0_109, %c0_110] : memref<1x128xf32, #tpu.memory_space<vmem>>, vector<1x128xf32>
    %181 = vector.broadcast %180 : vector<1x128xf32> to vector<2x128xf32>
    %182 = arith.addf %179, %181 : vector<2x128xf32>
    %183 = vector.extract_strided_slice %182 {offsets = [0, 0], sizes = [2, 96], strides = [1, 1]} : vector<2x128xf32> to vector<2x96xf32>
    %184 = arith.negf %183 : vector<2x96xf32>
    %185 = math.exp %184 : vector<2x96xf32>
    %cst_111 = arith.constant 1.000000e+00 : f32
    %186 = vector.broadcast %cst_111 : f32 to vector<2x96xf32>
    %187 = arith.addf %186, %185 : vector<2x96xf32>
    %188 = arith.divf %186, %187 : vector<2x96xf32>
    %189 = vector.extract_strided_slice %188 {offsets = [0, 0], sizes = [2, 32], strides = [1, 1]} : vector<2x96xf32> to vector<2x32xf32>
    %190 = vector.extract_strided_slice %188 {offsets = [0, 32], sizes = [2, 32], strides = [1, 1]} : vector<2x96xf32> to vector<2x32xf32>
    %191 = vector.extract_strided_slice %188 {offsets = [0, 64], sizes = [2, 32], strides = [1, 1]} : vector<2x96xf32> to vector<2x32xf32>
    %192 = vector.extract_strided_slice %182 {offsets = [0, 96], sizes = [2, 32], strides = [1, 1]} : vector<2x128xf32> to vector<2x32xf32>
    %193 = math.tanh %192 : vector<2x32xf32>
    %c0_112 = arith.constant 0 : index
    %c0_113 = arith.constant 0 : index
    %194 = vector.load %arg7[%c0_112, %c0_113] : memref<2x32xf32, #tpu.memory_space<vmem>>, vector<2x32xf32>
    %195 = arith.mulf %190, %194 : vector<2x32xf32>
    %196 = arith.mulf %189, %193 : vector<2x32xf32>
    %197 = arith.addf %195, %196 : vector<2x32xf32>
    %198 = math.tanh %197 : vector<2x32xf32>
    %199 = arith.mulf %191, %198 : vector<2x32xf32>
    %c0_114 = arith.constant 0 : index
    %c0_115 = arith.constant 0 : index
    %200 = vector.load %arg7[%c0_114, %c0_115] : memref<2x32xf32, #tpu.memory_space<vmem>>, vector<2x32xf32>
    tpu.vector_store %arg7[%c0_114, %c0_115], %197 {strides = array<i32>} : memref<2x32xf32, #tpu.memory_space<vmem>>, vector<2x32xf32>,
    %c0_116 = arith.constant 0 : index
    %c0_117 = arith.constant 0 : index
    %201 = vector.load %arg6[%c0_116, %c0_117] : memref<2x32xf32, #tpu.memory_space<vmem>>, vector<2x32xf32>
    tpu.vector_store %arg6[%c0_116, %c0_117], %199 {strides = array<i32>} : memref<2x32xf32, #tpu.memory_space<vmem>>, vector<2x32xf32>,
    %c6_i32 = arith.constant 6 : i32
    %c0_118 = arith.constant 0 : index
    %c0_119 = arith.constant 0 : index
    %202 = vector.load %arg6[%c0_118, %c0_119] : memref<2x32xf32, #tpu.memory_space<vmem>>, vector<2x32xf32>
    %203 = arith.truncf %202 : vector<2x32xf32> to vector<2x32xbf16>
    %c0_120 = arith.constant 0 : index
    %c0_121 = arith.constant 0 : index
    %204 = vector.load %arg4[%c0_120, %c0_121] : memref<32x128xbf16, #tpu.memory_space<vmem>>, vector<32x128xbf16>
    %cst_122 = arith.constant dense<0.000000e+00> : vector<2x128xf32>
    %205 = tpu.matmul %203, %204, %cst_122 {dimension_numbers = #tpu.dot_dimension_numbers<[1], [0], [0], [1], [0, 0, 1, 1], [], []>} : vector<2x32xbf16>, vector<32x128xbf16>, vector<2x128xf32> -> vector<2x128xf32>
    %c0_123 = arith.constant 0 : index
    %206 = arith.index_cast %c6_i32 : i32 to index
    %c0_124 = arith.constant 0 : index
    %207 = vector.load %arg1[%c0_123, %206, %c0_124] : memref<2x8x8xf32, #tpu.memory_space<vmem>>, vector<2x1x8xf32>
    %208 = vector.shape_cast %207 : vector<2x1x8xf32> to vector<2x8xf32>
    %209 = arith.truncf %208 : vector<2x8xf32> to vector<2x8xbf16>
    %c0_125 = arith.constant 0 : index
    %c0_126 = arith.constant 0 : index
    %210 = vector.load %arg2[%c0_125, %c0_126] : memref<8x128xbf16, #tpu.memory_space<vmem>>, vector<8x128xbf16>
    %cst_127 = arith.constant dense<0.000000e+00> : vector<2x128xf32>
    %211 = tpu.matmul %209, %210, %cst_127 {dimension_numbers = #tpu.dot_dimension_numbers<[1], [0], [0], [1], [0, 0, 1, 1], [], []>} : vector<2x8xbf16>, vector<8x128xbf16>, vector<2x128xf32> -> vector<2x128xf32>
    %212 = arith.addf %205, %211 : vector<2x128xf32>
    %c0_128 = arith.constant 0 : index
    %c0_129 = arith.constant 0 : index
    %213 = vector.load %arg3[%c0_128, %c0_129] : memref<1x128xf32, #tpu.memory_space<vmem>>, vector<1x128xf32>
    %214 = vector.broadcast %213 : vector<1x128xf32> to vector<2x128xf32>
    %215 = arith.addf %212, %214 : vector<2x128xf32>
    %216 = vector.extract_strided_slice %215 {offsets = [0, 0], sizes = [2, 96], strides = [1, 1]} : vector<2x128xf32> to vector<2x96xf32>
    %217 = arith.negf %216 : vector<2x96xf32>
    %218 = math.exp %217 : vector<2x96xf32>
    %cst_130 = arith.constant 1.000000e+00 : f32
    %219 = vector.broadcast %cst_130 : f32 to vector<2x96xf32>
    %220 = arith.addf %219, %218 : vector<2x96xf32>
    %221 = arith.divf %219, %220 : vector<2x96xf32>
    %222 = vector.extract_strided_slice %221 {offsets = [0, 0], sizes = [2, 32], strides = [1, 1]} : vector<2x96xf32> to vector<2x32xf32>
    %223 = vector.extract_strided_slice %221 {offsets = [0, 32], sizes = [2, 32], strides = [1, 1]} : vector<2x96xf32> to vector<2x32xf32>
    %224 = vector.extract_strided_slice %221 {offsets = [0, 64], sizes = [2, 32], strides = [1, 1]} : vector<2x96xf32> to vector<2x32xf32>
    %225 = vector.extract_strided_slice %215 {offsets = [0, 96], sizes = [2, 32], strides = [1, 1]} : vector<2x128xf32> to vector<2x32xf32>
    %226 = math.tanh %225 : vector<2x32xf32>
    %c0_131 = arith.constant 0 : index
    %c0_132 = arith.constant 0 : index
    %227 = vector.load %arg7[%c0_131, %c0_132] : memref<2x32xf32, #tpu.memory_space<vmem>>, vector<2x32xf32>
    %228 = arith.mulf %223, %227 : vector<2x32xf32>
    %229 = arith.mulf %222, %226 : vector<2x32xf32>
    %230 = arith.addf %228, %229 : vector<2x32xf32>
    %231 = math.tanh %230 : vector<2x32xf32>
    %232 = arith.mulf %224, %231 : vector<2x32xf32>
    %c0_133 = arith.constant 0 : index
    %c0_134 = arith.constant 0 : index
    %233 = vector.load %arg7[%c0_133, %c0_134] : memref<2x32xf32, #tpu.memory_space<vmem>>, vector<2x32xf32>
    tpu.vector_store %arg7[%c0_133, %c0_134], %230 {strides = array<i32>} : memref<2x32xf32, #tpu.memory_space<vmem>>, vector<2x32xf32>,
    %c0_135 = arith.constant 0 : index
    %c0_136 = arith.constant 0 : index
    %234 = vector.load %arg6[%c0_135, %c0_136] : memref<2x32xf32, #tpu.memory_space<vmem>>, vector<2x32xf32>
    tpu.vector_store %arg6[%c0_135, %c0_136], %232 {strides = array<i32>} : memref<2x32xf32, #tpu.memory_space<vmem>>, vector<2x32xf32>,
    %c7_i32 = arith.constant 7 : i32
    %c0_137 = arith.constant 0 : index
    %c0_138 = arith.constant 0 : index
    %235 = vector.load %arg6[%c0_137, %c0_138] : memref<2x32xf32, #tpu.memory_space<vmem>>, vector<2x32xf32>
    %236 = arith.truncf %235 : vector<2x32xf32> to vector<2x32xbf16>
    %c0_139 = arith.constant 0 : index
    %c0_140 = arith.constant 0 : index
    %237 = vector.load %arg4[%c0_139, %c0_140] : memref<32x128xbf16, #tpu.memory_space<vmem>>, vector<32x128xbf16>
    %cst_141 = arith.constant dense<0.000000e+00> : vector<2x128xf32>
    %238 = tpu.matmul %236, %237, %cst_141 {dimension_numbers = #tpu.dot_dimension_numbers<[1], [0], [0], [1], [0, 0, 1, 1], [], []>} : vector<2x32xbf16>, vector<32x128xbf16>, vector<2x128xf32> -> vector<2x128xf32>
    %c0_142 = arith.constant 0 : index
    %239 = arith.index_cast %c7_i32 : i32 to index
    %c0_143 = arith.constant 0 : index
    %240 = vector.load %arg1[%c0_142, %239, %c0_143] : memref<2x8x8xf32, #tpu.memory_space<vmem>>, vector<2x1x8xf32>
    %241 = vector.shape_cast %240 : vector<2x1x8xf32> to vector<2x8xf32>
    %242 = arith.truncf %241 : vector<2x8xf32> to vector<2x8xbf16>
    %c0_144 = arith.constant 0 : index
    %c0_145 = arith.constant 0 : index
    %243 = vector.load %arg2[%c0_144, %c0_145] : memref<8x128xbf16, #tpu.memory_space<vmem>>, vector<8x128xbf16>
    %cst_146 = arith.constant dense<0.000000e+00> : vector<2x128xf32>
    %244 = tpu.matmul %242, %243, %cst_146 {dimension_numbers = #tpu.dot_dimension_numbers<[1], [0], [0], [1], [0, 0, 1, 1], [], []>} : vector<2x8xbf16>, vector<8x128xbf16>, vector<2x128xf32> -> vector<2x128xf32>
    %245 = arith.addf %238, %244 : vector<2x128xf32>
    %c0_147 = arith.constant 0 : index
    %c0_148 = arith.constant 0 : index
    %246 = vector.load %arg3[%c0_147, %c0_148] : memref<1x128xf32, #tpu.memory_space<vmem>>, vector<1x128xf32>
    %247 = vector.broadcast %246 : vector<1x128xf32> to vector<2x128xf32>
    %248 = arith.addf %245, %247 : vector<2x128xf32>
    %249 = vector.extract_strided_slice %248 {offsets = [0, 0], sizes = [2, 96], strides = [1, 1]} : vector<2x128xf32> to vector<2x96xf32>
    %250 = arith.negf %249 : vector<2x96xf32>
    %251 = math.exp %250 : vector<2x96xf32>
    %cst_149 = arith.constant 1.000000e+00 : f32
    %252 = vector.broadcast %cst_149 : f32 to vector<2x96xf32>
    %253 = arith.addf %252, %251 : vector<2x96xf32>
    %254 = arith.divf %252, %253 : vector<2x96xf32>
    %255 = vector.extract_strided_slice %254 {offsets = [0, 0], sizes = [2, 32], strides = [1, 1]} : vector<2x96xf32> to vector<2x32xf32>
    %256 = vector.extract_strided_slice %254 {offsets = [0, 32], sizes = [2, 32], strides = [1, 1]} : vector<2x96xf32> to vector<2x32xf32>
    %257 = vector.extract_strided_slice %254 {offsets = [0, 64], sizes = [2, 32], strides = [1, 1]} : vector<2x96xf32> to vector<2x32xf32>
    %258 = vector.extract_strided_slice %248 {offsets = [0, 96], sizes = [2, 32], strides = [1, 1]} : vector<2x128xf32> to vector<2x32xf32>
    %259 = math.tanh %258 : vector<2x32xf32>
    %c0_150 = arith.constant 0 : index
    %c0_151 = arith.constant 0 : index
    %260 = vector.load %arg7[%c0_150, %c0_151] : memref<2x32xf32, #tpu.memory_space<vmem>>, vector<2x32xf32>
    %261 = arith.mulf %256, %260 : vector<2x32xf32>
    %262 = arith.mulf %255, %259 : vector<2x32xf32>
    %263 = arith.addf %261, %262 : vector<2x32xf32>
    %264 = math.tanh %263 : vector<2x32xf32>
    %265 = arith.mulf %257, %264 : vector<2x32xf32>
    %c0_152 = arith.constant 0 : index
    %c0_153 = arith.constant 0 : index
    %266 = vector.load %arg7[%c0_152, %c0_153] : memref<2x32xf32, #tpu.memory_space<vmem>>, vector<2x32xf32>
    tpu.vector_store %arg7[%c0_152, %c0_153], %263 {strides = array<i32>} : memref<2x32xf32, #tpu.memory_space<vmem>>, vector<2x32xf32>,
    %c0_154 = arith.constant 0 : index
    %c0_155 = arith.constant 0 : index
    %267 = vector.load %arg6[%c0_154, %c0_155] : memref<2x32xf32, #tpu.memory_space<vmem>>, vector<2x32xf32>
    tpu.vector_store %arg6[%c0_154, %c0_155], %265 {strides = array<i32>} : memref<2x32xf32, #tpu.memory_space<vmem>>, vector<2x32xf32>,
    %c8_i32 = arith.constant 8 : i32
    %c0_156 = arith.constant 0 : index
    %c0_157 = arith.constant 0 : index
    %268 = vector.load %arg6[%c0_156, %c0_157] : memref<2x32xf32, #tpu.memory_space<vmem>>, vector<2x32xf32>
    %c0_158 = arith.constant 0 : index
    %c0_159 = arith.constant 0 : index
    %269 = vector.load %arg5[%c0_158, %c0_159] : memref<2x32xf32, #tpu.memory_space<vmem>>, vector<2x32xf32>
    tpu.vector_store %arg5[%c0_158, %c0_159], %268 {strides = array<i32>} : memref<2x32xf32, #tpu.memory_space<vmem>>, vector<2x32xf32>,
    return
  }
  func.func @transform_0(%arg0: i32) -> (i32, i32, i32) {
    %c0_i32 = arith.constant 0 : i32
    %c0_i32_0 = arith.constant 0 : i32
    %c0_i32_1 = arith.constant 0 : i32
    return %arg0, %c0_i32, %c0_i32_0 : i32, i32, i32
  }
  func.func @transform_1(%arg0: i32) -> (i32, i32) {
    %c0_i32 = arith.constant 0 : i32
    %c0_i32_0 = arith.constant 0 : i32
    %c0_i32_1 = arith.constant 0 : i32
    return %c0_i32, %c0_i32_0 : i32, i32
  }
  func.func @transform_2(%arg0: i32) -> (i32, i32) {
    %c0_i32 = arith.constant 0 : i32
    %c0_i32_0 = arith.constant 0 : i32
    %c0_i32_1 = arith.constant 0 : i32
    return %c0_i32, %c0_i32_0 : i32, i32
  }
  func.func @transform_3(%arg0: i32) -> (i32, i32) {
    %c0_i32 = arith.constant 0 : i32
    %c0_i32_0 = arith.constant 0 : i32
    %c0_i32_1 = arith.constant 0 : i32
    return %c0_i32, %c0_i32_0 : i32, i32
  }
  func.func @transform_4(%arg0: i32) -> (i32, i32) {
    %c0_i32 = arith.constant 0 : i32
    %c0_i32_0 = arith.constant 0 : i32
    return %arg0, %c0_i32 : i32, i32
  }
}

module attributes {stable_mosaic.version = 11 : i64} {
  func.func @_head_kernel(%arg0: i32, %arg1: memref<2x32xf32, #tpu.memory_space<vmem>>, %arg2: memref<32x128xbf16, #tpu.memory_space<vmem>>, %arg3: memref<1x128xf32, #tpu.memory_space<vmem>>, %arg4: memref<128x32xbf16, #tpu.memory_space<vmem>>, %arg5: memref<1x32xf32, #tpu.memory_space<vmem>>, %arg6: memref<32x4xbf16, #tpu.memory_space<vmem>>, %arg7: memref<1x4xf32, #tpu.memory_space<vmem>>, %arg8: memref<2x4xf32, #tpu.memory_space<vmem>>) attributes {dimension_semantics = [#tpu.dimension_semantics<parallel>], iteration_bounds = array<i64: 1>, scalar_prefetch = 0 : i64, scratch_operands = 0 : i64, tpu.core_type = #tpu.core_type<tc>, window_params = [{transform_indices = @transform_0, window_bounds = array<i64: 2, 32>}, {pipeline_mode = #tpu.pipeline_mode<synchronous>, transform_indices = @transform_1, window_bounds = array<i64: 32, 128>}, {pipeline_mode = #tpu.pipeline_mode<synchronous>, transform_indices = @transform_2, window_bounds = array<i64: 1, 128>}, {pipeline_mode = #tpu.pipeline_mode<synchronous>, transform_indices = @transform_3, window_bounds = array<i64: 128, 32>}, {pipeline_mode = #tpu.pipeline_mode<synchronous>, transform_indices = @transform_4, window_bounds = array<i64: 1, 32>}, {pipeline_mode = #tpu.pipeline_mode<synchronous>, transform_indices = @transform_5, window_bounds = array<i64: 32, 4>}, {pipeline_mode = #tpu.pipeline_mode<synchronous>, transform_indices = @transform_6, window_bounds = array<i64: 1, 4>}, {transform_indices = @transform_7, window_bounds = array<i64: 2, 4>}]} {
    %c0 = arith.constant 0 : index
    %c0_0 = arith.constant 0 : index
    %0 = vector.load %arg1[%c0, %c0_0] : memref<2x32xf32, #tpu.memory_space<vmem>>, vector<2x32xf32>
    %1 = arith.truncf %0 : vector<2x32xf32> to vector<2x32xbf16>
    %c0_1 = arith.constant 0 : index
    %c0_2 = arith.constant 0 : index
    %2 = vector.load %arg2[%c0_1, %c0_2] : memref<32x128xbf16, #tpu.memory_space<vmem>>, vector<32x128xbf16>
    %cst = arith.constant dense<0.000000e+00> : vector<2x128xf32>
    %3 = tpu.matmul %1, %2, %cst {dimension_numbers = #tpu.dot_dimension_numbers<[1], [0], [0], [1], [0, 0, 1, 1], [], []>} : vector<2x32xbf16>, vector<32x128xbf16>, vector<2x128xf32> -> vector<2x128xf32>
    %c0_3 = arith.constant 0 : index
    %c0_4 = arith.constant 0 : index
    %4 = vector.load %arg3[%c0_3, %c0_4] : memref<1x128xf32, #tpu.memory_space<vmem>>, vector<1x128xf32>
    %5 = vector.broadcast %4 : vector<1x128xf32> to vector<2x128xf32>
    %6 = arith.addf %3, %5 : vector<2x128xf32>
    %cst_5 = arith.constant 5.000000e-01 : f32
    %7 = vector.broadcast %cst_5 : f32 to vector<2x128xf32>
    %8 = arith.mulf %7, %6 : vector<2x128xf32>
    %cst_6 = arith.constant 0.707106769 : f32
    %9 = vector.broadcast %cst_6 : f32 to vector<2x128xf32>
    %10 = arith.mulf %6, %9 : vector<2x128xf32>
    %11 = math.absf %10 : vector<2x128xf32>
    %cst_7 = arith.constant 0.327591091 : f32
    %12 = vector.broadcast %cst_7 : f32 to vector<2x128xf32>
    %13 = arith.mulf %12, %11 : vector<2x128xf32>
    %cst_8 = arith.constant 1.000000e+00 : f32
    %14 = vector.broadcast %cst_8 : f32 to vector<2x128xf32>
    %15 = arith.addf %14, %13 : vector<2x128xf32>
    %cst_9 = arith.constant 1.000000e+00 : f32
    %16 = vector.broadcast %cst_9 : f32 to vector<2x128xf32>
    %17 = arith.divf %16, %15 : vector<2x128xf32>
    %cst_10 = arith.constant 1.06140542 : f32
    %18 = vector.broadcast %cst_10 : f32 to vector<2x128xf32>
    %19 = arith.mulf %18, %17 : vector<2x128xf32>
    %cst_11 = arith.constant -1.45315206 : f32
    %20 = vector.broadcast %cst_11 : f32 to vector<2x128xf32>
    %21 = arith.addf %19, %20 : vector<2x128xf32>
    %22 = arith.mulf %21, %17 : vector<2x128xf32>
    %cst_12 = arith.constant 1.42141378 : f32
    %23 = vector.broadcast %cst_12 : f32 to vector<2x128xf32>
    %24 = arith.addf %22, %23 : vector<2x128xf32>
    %25 = arith.mulf %24, %17 : vector<2x128xf32>
    %cst_13 = arith.constant -0.284496725 : f32
    %26 = vector.broadcast %cst_13 : f32 to vector<2x128xf32>
    %27 = arith.addf %25, %26 : vector<2x128xf32>
    %28 = arith.mulf %27, %17 : vector<2x128xf32>
    %cst_14 = arith.constant 0.254829586 : f32
    %29 = vector.broadcast %cst_14 : f32 to vector<2x128xf32>
    %30 = arith.addf %28, %29 : vector<2x128xf32>
    %31 = arith.mulf %30, %17 : vector<2x128xf32>
    %cst_15 = arith.constant 0.000000e+00 : f32
    %32 = vector.broadcast %cst_15 : f32 to vector<2x128xf32>
    %33 = arith.subf %32, %11 : vector<2x128xf32>
    %34 = arith.mulf %33, %11 : vector<2x128xf32>
    %35 = math.exp %34 : vector<2x128xf32>
    %36 = arith.mulf %31, %35 : vector<2x128xf32>
    %cst_16 = arith.constant 1.000000e+00 : f32
    %37 = vector.broadcast %cst_16 : f32 to vector<2x128xf32>
    %38 = arith.subf %37, %36 : vector<2x128xf32>
    %cst_17 = arith.constant 0.000000e+00 : f32
    %39 = vector.broadcast %cst_17 : f32 to vector<2x128xf32>
    %40 = arith.cmpf oge, %10, %39 : vector<2x128xf32>
    %cst_18 = arith.constant 0.000000e+00 : f32
    %41 = vector.broadcast %cst_18 : f32 to vector<2x128xf32>
    %42 = arith.subf %41, %38 : vector<2x128xf32>
    %43 = arith.select %40, %38, %42 : vector<2x128xi1>, vector<2x128xf32>
    %cst_19 = arith.constant 1.000000e+00 : f32
    %44 = vector.broadcast %cst_19 : f32 to vector<2x128xf32>
    %45 = arith.addf %44, %43 : vector<2x128xf32>
    %46 = arith.mulf %8, %45 : vector<2x128xf32>
    %47 = arith.truncf %46 : vector<2x128xf32> to vector<2x128xbf16>
    %c0_20 = arith.constant 0 : index
    %c0_21 = arith.constant 0 : index
    %48 = vector.load %arg4[%c0_20, %c0_21] : memref<128x32xbf16, #tpu.memory_space<vmem>>, vector<128x32xbf16>
    %cst_22 = arith.constant dense<0.000000e+00> : vector<2x32xf32>
    %49 = tpu.matmul %47, %48, %cst_22 {dimension_numbers = #tpu.dot_dimension_numbers<[1], [0], [0], [1], [0, 0, 1, 1], [], []>} : vector<2x128xbf16>, vector<128x32xbf16>, vector<2x32xf32> -> vector<2x32xf32>
    %c0_23 = arith.constant 0 : index
    %c0_24 = arith.constant 0 : index
    %50 = vector.load %arg5[%c0_23, %c0_24] : memref<1x32xf32, #tpu.memory_space<vmem>>, vector<1x32xf32>
    %51 = vector.broadcast %50 : vector<1x32xf32> to vector<2x32xf32>
    %52 = arith.addf %49, %51 : vector<2x32xf32>
    %53 = arith.truncf %52 : vector<2x32xf32> to vector<2x32xbf16>
    %c0_25 = arith.constant 0 : index
    %c0_26 = arith.constant 0 : index
    %54 = vector.load %arg6[%c0_25, %c0_26] : memref<32x4xbf16, #tpu.memory_space<vmem>>, vector<32x4xbf16>
    %cst_27 = arith.constant dense<0.000000e+00> : vector<2x4xf32>
    %55 = tpu.matmul %53, %54, %cst_27 {dimension_numbers = #tpu.dot_dimension_numbers<[1], [0], [0], [1], [0, 0, 1, 1], [], []>} : vector<2x32xbf16>, vector<32x4xbf16>, vector<2x4xf32> -> vector<2x4xf32>
    %c0_28 = arith.constant 0 : index
    %c0_29 = arith.constant 0 : index
    %56 = vector.load %arg7[%c0_28, %c0_29] : memref<1x4xf32, #tpu.memory_space<vmem>>, vector<1x4xf32>
    %57 = vector.broadcast %56 : vector<1x4xf32> to vector<2x4xf32>
    %58 = arith.addf %55, %57 : vector<2x4xf32>
    %c0_30 = arith.constant 0 : index
    %c0_31 = arith.constant 0 : index
    %59 = vector.load %arg8[%c0_30, %c0_31] : memref<2x4xf32, #tpu.memory_space<vmem>>, vector<2x4xf32>
    tpu.vector_store %arg8[%c0_30, %c0_31], %58 {strides = array<i32>} : memref<2x4xf32, #tpu.memory_space<vmem>>, vector<2x4xf32>,
    return
  }
  func.func @transform_0(%arg0: i32) -> (i32, i32) {
    %c0_i32 = arith.constant 0 : i32
    %c0_i32_0 = arith.constant 0 : i32
    return %arg0, %c0_i32 : i32, i32
  }
  func.func @transform_1(%arg0: i32) -> (i32, i32) {
    %c0_i32 = arith.constant 0 : i32
    %c0_i32_0 = arith.constant 0 : i32
    %c0_i32_1 = arith.constant 0 : i32
    return %c0_i32, %c0_i32_0 : i32, i32
  }
  func.func @transform_2(%arg0: i32) -> (i32, i32) {
    %c0_i32 = arith.constant 0 : i32
    %c0_i32_0 = arith.constant 0 : i32
    %c0_i32_1 = arith.constant 0 : i32
    return %c0_i32, %c0_i32_0 : i32, i32
  }
  func.func @transform_3(%arg0: i32) -> (i32, i32) {
    %c0_i32 = arith.constant 0 : i32
    %c0_i32_0 = arith.constant 0 : i32
    %c0_i32_1 = arith.constant 0 : i32
    return %c0_i32, %c0_i32_0 : i32, i32
  }
  func.func @transform_4(%arg0: i32) -> (i32, i32) {
    %c0_i32 = arith.constant 0 : i32
    %c0_i32_0 = arith.constant 0 : i32
    %c0_i32_1 = arith.constant 0 : i32
    return %c0_i32, %c0_i32_0 : i32, i32
  }
  func.func @transform_5(%arg0: i32) -> (i32, i32) {
    %c0_i32 = arith.constant 0 : i32
    %c0_i32_0 = arith.constant 0 : i32
    %c0_i32_1 = arith.constant 0 : i32
    return %c0_i32, %c0_i32_0 : i32, i32
  }
  func.func @transform_6(%arg0: i32) -> (i32, i32) {
    %c0_i32 = arith.constant 0 : i32
    %c0_i32_0 = arith.constant 0 : i32
    %c0_i32_1 = arith.constant 0 : i32
    return %c0_i32, %c0_i32_0 : i32, i32
  }
  func.func @transform_7(%arg0: i32) -> (i32, i32) {
    %c0_i32 = arith.constant 0 : i32
    %c0_i32_0 = arith.constant 0 : i32
    return %arg0, %c0_i32 : i32, i32
  }
}

</mosaic_0001>

<bundles_post_ra>
// kernel: bbox_lstm_forward.3
= control target key start
LH: loop header
LB: loop body
LE: loop exit
PB: predicated region body
PF: predicated region fallthrough
CT: control target
= control target key end

     0   :  { %v430_v1 = vmov 0.0   ;;  %vm431_vm0 = vmmov 0   ;;  %vm53_vm1 = vcmask 261120   ;;  %s535_s0 = inlined_call_operand.vmem [shape: f32[2,32], index: 0, kind: input, shape index: {}]   ;;  %s536_s1 = inlined_call_operand.vmem [shape: bf16[32,128], index: 1, kind: input, shape index: {}]   ;;  %s537_s2 = inlined_call_operand.vmem [shape: f32[1,128], index: 2, kind: input, shape index: {}]   ;;  %s538_s3 = inlined_call_operand.vmem [shape: bf16[128,32], index: 3, kind: input, shape index: {}]   ;;  %s539_s4 = inlined_call_operand.vmem [shape: f32[1,32], index: 4, kind: input, shape index: {}]   ;;  %s540_s5 = inlined_call_operand.vmem [shape: bf16[32,4], index: 5, kind: input, shape index: {}]   ;;  %s541_s6 = inlined_call_operand.vmem [shape: f32[1,4], index: 6, kind: input, shape index: {}]   ;;  %s542_s7 = inlined_call_operand.hbm [shape: f32[2,4], index: 7, kind: output, shape index: {}]  }
   0x1   :  { %v390_v0 = vld [vmem:[%s536_s1] sm:$0xff]   ;;  %351 = vmatprep.subr.bf16.mxu0 %v430_v1  ;;  %359 = vmatprep.subr.bf16.mxu1 %v430_v1  ;;  %v391_v2 = vld [vmem:[%s536_s1 + $0x8] sm:$0xff]  }
   0x2   :  { %352 = vmatpush3.bf16.msra.mxu0 %v390_v0  ;;  %355 = vmatprep.mubr.msk.bf16.mxu0 %vm431_vm0, %v430_v1  ;;  %v28_v3 = vld [vmem:[%s535_s0] sm:$0x3] }
   0x3   :  { %353 = vmatprep.subr.bf16.mxu0 %v430_v1  ;;  %375 = vmatprep.mubr.msk.bf16.mxu1 %vm431_vm0, %v430_v1  ;;  %v29_v4 = vpack.c.bf16 %v28_v3, %v28_v3 }
   0x6   :  { %354 = vmatpush3.bf16.msra.mxu0 %v391_v2 }
   0x7   :  { %379 = vmatprep.subr.bf16.mxu0 %v430_v1 }
   0x9   :  { %356 = vmatmul.mubr.msk.bf16.vlgmr.msra.gmra.mrb[0].mxu0 %vm53_vm1, %v29_v4 }
   0xa   :  { %12 = vsyncpa [#allocation3], 0  ;;  %383 = vmatprep.mubr.msk.bf16.mxu0 %vm431_vm0, %v430_v1  ;;  %v392_v5 = vld [vmem:[%s538_s3] sm:$0xff]   ;;  %v393_v6 = vld [vmem:[%s538_s3 + $0x8] sm:$0xff]   ;;  %s432_s29 = smov [#allocation2]   ;;  %vm303_vm3 = vcmask 25600  }
   0xb   :  { %360 = vmatpush3.bf16.msra.mxu1 %v392_v5  ;;  %v394_v7 = vld [vmem:[%s538_s3 + $0x10] sm:$0xff]   ;;  %v395_v8 = vld [vmem:[%s538_s3 + $0x18] sm:$0xff]   ;;  %v396_v9 = vld [vmem:[%s538_s3 + $0x20] sm:$0xff]   ;;  %s311_s30 = sshll.u32 %s432_s29, 4  ;;  %s312_s30 = int_to_ptr.vmem [resolvable:$true] %s311_s30 }
   0xc   :  { %361 = vmatprep.subr.bf16.mxu1 %v430_v1  ;;  %v397_v10 = vld [vmem:[%s538_s3 + $0x28] sm:$0xff]   ;;  %v398_v11 = vld [vmem:[%s538_s3 + $0x30] sm:$0xff]   ;;  %v399_v12 = vld [vmem:[%s538_s3 + $0x38] sm:$0xff]   ;;  %p411_p1 = scmp.lt.s32.totalorder %s312_s30, %s312_s30 }
   0xd   :  { %v400_v13 = vld [vmem:[%s540_s5] sm:$0xff]   ;;  %v401_v46 = vld [vmem:[%s540_s5 + $0x8] sm:$0xff]  }
   0xe   :  { %380 = vmatpush3.bf16.msra.mxu0 %v400_v13  ;;  %v319_v14 = vld [vmem:[%s537_s2] ss:$0 sm:$0xff] }
   0xf   :  { %362 = vmatpush3.bf16.msra.mxu1 %v393_v6  ;;  %381 = vmatprep.subr.bf16.mxu0 %v430_v1  ;;  %v323_v47 = vld [vmem:[%s539_s4] ss:$0 sm:$0xff]  ;;  %s406_s4 = scalar_lea.vmem %s312_s30, 32 }
  0x10   :  { %363 = vmatprep.subr.bf16.mxu1 %v430_v1  ;;  %v332_v54 = vld [vmem:[%s541_s6] ss:$0 sm:$0xff]  ;;  %p407_p0 = scmp.ne.s32.totalorder %s312_s30, %s406_s4  ;;  %p412_p2 = scmp.lt.s32.totalorder %s406_s4, %s406_s4 }
  0x12   :  { %382 = vmatpush3.bf16.msra.mxu0 %v401_v46  ;;  %p413_p3 = por %p412_p2, %p411_p1 }
  0x13   :  { %364 = vmatpush3.bf16.msra.mxu1 %v394_v7 }
  0x14   :  { %365 = vmatprep.subr.bf16.mxu1 %v430_v1  ;;  %p414_p4 = pnand %p413_p3, %p407_p0 }
  0x17   :  { %366 = vmatpush3.bf16.msra.mxu1 %v395_v8 }
  0x18   :  { %367 = vmatprep.subr.bf16.mxu1 %v430_v1 }
  0x1b   :  { %368 = vmatpush3.bf16.msra.mxu1 %v396_v9 }
  0x1c   :  { %369 = vmatprep.subr.bf16.mxu1 %v430_v1 }
  0x1f   :  { %370 = vmatpush3.bf16.msra.mxu1 %v397_v10 }
  0x20   :  { %371 = vmatprep.subr.bf16.mxu1 %v430_v1 }
  0x23   :  { %372 = vmatpush3.bf16.msra.mxu1 %v398_v11 }
  0x24   :  { %373 = vmatprep.subr.bf16.mxu1 %v430_v1 }
  0x27   :  { %374 = vmatpush3.bf16.msra.mxu1 %v399_v12 }
  0xdc   :  { %v91_v15 = vpop.f32.mrb[0].mxu0 }
  0xdd   :  { %v92_v16 = vadd.f32 %v319_v14, %v91_v15  ;;  %v357_v17 = vpop.f32.mrb[1].mxu0 }
  0xde   :  { %v94_v18 = vpop.f32.mrb[2].mxu0 }
  0xdf   :  { %v98_v19 = vmul.f32 0.70710677, %v92_v16  ;;  %v358_v20 = vpop.f32.mrb[3].mxu0  ;;  %v97_v42 = vmul.f32 0.5, %v92_v16 }
  0xe1   :  { %v99_v21 = vand.u32 2147483647, %v98_v19  ;;  %vm119_vm2 = vcmp.ge.f32.partialorder %v98_v19, 0.0 }
  0xe3   :  { %v100_v22 = vmul.f32 0.3275911, %v99_v21  ;;  %v113_v24 = vsub.f32 0.0, %v99_v21 }
  0xe5   :  { %v101_v23 = vadd.f32 1.0, %v100_v22  ;;  %v114_v26 = vmul.f32 %v113_v24, %v99_v21 }
  0xe7   :  { %402 = vrcp.f32 %v101_v23  ;;  %v115_v29 = vmul.f32 1.442695, %v114_v26 }
  0xe9   :  { %404 = vpow2.f32 %v115_v29 }
  0xf1   :  { %v403_v25 = vpop.eup %402 }
  0xf2   :  { %v104_v27 = vmul.f32 1.0614054, %v403_v25 }
  0xf3   :  { %v405_v37 = vpop.eup %404 }
  0xf4   :  { %v105_v28 = vadd.f32 -1.4531521, %v104_v27 }
  0xf6   :  { %v106_v30 = vmul.f32 %v403_v25, %v105_v28 }
  0xf8   :  { %v107_v31 = vadd.f32 1.4214138, %v106_v30 }
  0xfa   :  { %v108_v32 = vmul.f32 %v403_v25, %v107_v31 }
  0xfc   :  { %v109_v33 = vadd.f32 -0.28449672, %v108_v32 }
  0xfe   :  { %v110_v34 = vmul.f32 %v403_v25, %v109_v33 }
 0x100   :  { %v111_v35 = vadd.f32 0.2548296, %v110_v34 }
 0x102   :  { %v112_v36 = vmul.f32 %v403_v25, %v111_v35 }
 0x104   :  { %v117_v38 = vmul.f32 %v405_v37, %v112_v36 }
 0x106   :  { %v118_v39 = vsub.f32 1.0, %v117_v38 }
 0x108   :  { %v120_v40 = vsub.f32 0.0, %v118_v39 }
 0x10a   :  { %v121_v41 = vsel %vm119_vm2, %v118_v39, %v120_v40 }
 0x10b   :  { %v122_v43 = vadd.f32 1.0, %v121_v41 }
 0x10d   :  { %v123_v44 = vmul.f32 %v122_v43, %v97_v42 }
 0x10f   :  { %v124_v45 = vpack.c.bf16 %v123_v44, %v123_v44 }
 0x111   :  { %376 = vmatmul.mubr.bf16.vlgmr.msra.gmra.mrb[0].mxu1 %v124_v45 }
 0x1e4   :  { %v230_v48 = vpop.f32.mrb[0].mxu1 }
 0x1e5   :  { %v231_v49 = vadd.f32 %v323_v47, %v230_v48  ;;  %v377_v50 = vpop.f32.mrb[1].mxu1 }
 0x1e6   :  { %v233_v51 = vpop.f32.mrb[2].mxu1 }
 0x1e7   :  { %v236_v52 = vpack.c.bf16 %v231_v49, %v231_v49  ;;  %v378_v53 = vpop.f32.mrb[3].mxu1 }
 0x1e9   :  { %384 = vmatmul.mubr.msk.bf16.vlgmr.msra.gmra.mrb[4].mxu0 %vm53_vm1, %v236_v52 }
 0x2bc   :  { %v297_v55 = vpop.f32.mrb[4].mxu0 }
 0x2bd   :  { %v298_v56 = vadd.f32 %v332_v54, %v297_v55  ;;  %v385_v57 = vpop.f32.mrb[5].mxu0 }
 0x2be   :  { %v300_v58 = vpop.f32.mrb[6].mxu0 }
 0x2bf   :  { %v386_v59 = vpop.f32.mrb[7].mxu0  ;;  %304 = vst.msk [vmem:[#allocation2] sm:$0x3] %vm303_vm3, %v298_v56 }
 0x2c0   :  { %417 = shalt.err (!%p414_p4)
}
 0x2c1   :  { %s418_s6 = scalar_lea.hbm %s542_s7, 32 }
 0x2c2   :  { %p419_p5 = scmp.ne.s32.totalorder %s542_s7, %s418_s6  ;;  %p422_p6 = scmp.lt.u32.totalorder %s418_s6, %s542_s7 }
 0x2c4   :  { %p424_p7 = pnand %p422_p6, %p419_p5 }
 0x2c6   :  { %427 = shalt.err (!%p424_p7)
}
 0x2c7   :  { %314 = dma.vmem_to_hbm [thread:$0]  %s312_s30, 32, %s542_s7, [#allocation3]  }
 0x2c8   :  { %428 = dma.done.wait [#allocation3], 32  }
 0x2c9   :  { %429 = vsyncadd [#allocation3], 4294967264 }
 0x2ca   :  { %318 = vsyncpa [#allocation3], 1 }

// kernel: bbox_lstm_forward.2
= control target key start
LH: loop header
LB: loop body
LE: loop exit
PB: predicated region body
PF: predicated region fallthrough
CT: control target
= control target key end

     0   :  { %vm44_vm0 = vcmask 1043456   ;;  %v1644_v0 = vmov 0.0   ;;  %vm37_vm1 = vcmask 1041409   ;;  %vm1645_vm2 = vmmov 0   ;;  %s1646_s27 = smov 32   ;;  %s1648_s12 = smov 64   ;;  %s1967_s3 = inlined_call_operand.vmem [shape: bf16[32,128], index: 3, kind: input, shape index: {}]   ;;  %s1968_s1 = inlined_call_operand.vmem [shape: bf16[8,128], index: 1, kind: input, shape index: {}]   ;;  %s1969_s0 = inlined_call_operand.vmem [shape: f32[2,8,8], index: 0, kind: input, shape index: {}]   ;;  %s1970_s2 = inlined_call_operand.vmem [shape: f32[1,128], index: 2, kind: input, shape index: {}]   ;;  %s1971_s4 = inlined_call_operand.vmem [shape: f32[2,32], index: 4, kind: output, shape index: {}]  }
   0x1   :  { %1453 = vmatprep.subr.bf16.mxu1 %v1644_v0  ;;  %v1564_v1 = vld [vmem:[%s1967_s3] sm:$0xff]   ;;  %1447 = vmatprep.subr.bf16.mxu0 %v1644_v0  ;;  %v1565_v4 = vld [vmem:[%s1967_s3 + $0x8] sm:$0xff]   ;;  %vm40_vm3 = vcmask 64512   ;;  %vm18_vm4 = vcmask 254976   ;;  %vm100_vm5 = vcmask 261120  }
   0x2   :  { %v31_v2 = vld [vmem:[%s1968_s1] sm:$0xf]  ;;  %1449 = vmatprep.mubr.msk.bf16.mxu0 %vm1645_vm2, %v1644_v0  ;;  %1457 = vmatprep.mubr.msk.bf16.mxu1 %vm1645_vm2, %v1644_v0  ;;  %v28_v6 = vld [vmem:[%s1969_s0 + $0x8] sm:$0x1]  ;;  %19 = vst.msk [vmem:[#allocation2] sm:$0x3] %vm18_vm4, %v1644_v0 }
   0x3   :  { %1454 = vmatpush3.bf16.msra.mxu1 %v1564_v1  ;;  %v46_v3 = vsel %vm44_vm0, %v31_v2, 0  ;;  %v27_v5 = vld [vmem:[%s1969_s0] sm:$0x1]  ;;  %v30_v8 = vpack.c.bf16 %v28_v6, %v28_v6  ;;  %20 = vst.msk [vmem:[#allocation3] sm:$0x3] %vm18_vm4, %v1644_v0  ;;  %v1567_v48 = vld [vmem:[%s1967_s3 + $0x8] sm:$0xff]  }
   0x4   :  { %1455 = vmatprep.subr.bf16.mxu1 %v1644_v0  ;;  %1448 = vmatpush3.bf16.msra.mxu0 %v46_v3  ;;  %v29_v7 = vpack.c.bf16 %v27_v5, %v27_v5  ;;  %v1713_v19 = vld [vmem:[%s1970_s2] ss:$0 sm:$0xff]  ;;  %s1647_s2 = smov 96   ;;  %v198_v40 = vld [vmem:[%s1969_s0 + $0x9] sm:$0x1] }
   0x5   :  { %1461 = vmatprep.subr.bf16.mxu0 %v1644_v0  ;;  %v35_v10 = vunpack.c.l.b16 %v30_v8  ;;  %v200_v41 = vpack.c.bf16 %v198_v40, %v198_v40  ;;  %v197_v42 = vld [vmem:[%s1969_s0 + $0x1] sm:$0x1] }
   0x6   :  { %v34_v9 = vunpack.c.l.b16 %v29_v7  ;;  %v201_v43 = vld [vmem:[%s1968_s1] sm:$0xf]  ;;  %v199_v45 = vpack.c.bf16 %v197_v42, %v197_v42 }
   0x7   :  { %1456 = vmatpush3.bf16.msra.mxu1 %v1565_v4  ;;  %v36_v11 = vrot.slane %v35_v10, 7  ;;  %v1566_v44 = vld [vmem:[%s1967_s3] sm:$0xff]   ;;  %v205_v46 = vunpack.c.l.b16 %v200_v41  ;;  %v213_v47 = vsel %vm44_vm0, %v201_v43, 0 }
   0x8   :  { %1467 = vmatprep.subr.bf16.mxu1 %v1644_v0  ;;  %v204_v49 = vunpack.c.l.b16 %v199_v45 }
   0x9   :  { %v38_v12 = vsel %vm37_vm1, %v36_v11, %v34_v9  ;;  %v21_v14 = vld [vmem:[#allocation2] sm:$0x3]  ;;  %v206_v50 = vrot.slane %v205_v46, 7 }
   0xa   :  { %v39_v13 = vpack.c.b16 %v38_v12, %v38_v12  ;;  %v22_v15 = vpack.c.bf16 %v21_v14, %v21_v14  ;;  %v159_v28 = vld [vmem:[#allocation3] sm:$0x3] }
   0xb   :  { %v207_v51 = vsel %vm37_vm1, %v206_v50, %v204_v49 }
   0xc   :  { %1450 = vmatmul.mubr.msk.bf16.vlgmr.msra.gmra.mrb[0].mxu0 %vm40_vm3, %v39_v13  ;;  %1458 = vmatmul.mubr.msk.bf16.vlgmr.msra.gmra.mrb[0].mxu1 %vm100_vm5, %v22_v15  ;;  %v208_v52 = vpack.c.b16 %v207_v51, %v207_v51 }
   0xd   :  { %1463 = vmatprep.mubr.msk.bf16.mxu0 %vm1645_vm2, %v1644_v0  ;;  %1471 = vmatprep.mubr.msk.bf16.mxu1 %vm1645_vm2, %v1644_v0 }
   0xe   :  { %1462 = vmatpush3.bf16.msra.mxu0 %v213_v47  ;;  %1468 = vmatpush3.bf16.msra.mxu1 %v1566_v44 }
   0xf   :  { %1469 = vmatprep.subr.bf16.mxu1 %v1644_v0  ;;  %1475 = vmatprep.subr.bf16.mxu0 %v1644_v0 }
  0x12   :  { %1470 = vmatpush3.bf16.msra.mxu1 %v1567_v48 }
  0x13   :  { %1481 = vmatprep.subr.bf16.mxu1 %v1644_v0 }
  0x14   :  { %1464 = vmatmul.mubr.msk.bf16.vlgmr.msra.gmra.mrb[4].mxu0 %vm40_vm3, %v208_v52 }
  0x15   :  { %1477 = vmatprep.mubr.msk.bf16.mxu0 %vm1645_vm2, %v1644_v0 }
  0xdf   :  { %v82_v16 = vpop.f32.mrb[0].mxu0  ;;  %v138_v18 = vpop.f32.mrb[0].mxu1 }
  0xe0   :  { %v1451_v17 = vpop.f32.mrb[1].mxu0  ;;  %v139_v21 = vadd.f32 %v138_v18, %v82_v16  ;;  %v1459_v22 = vpop.f32.mrb[1].mxu1 }
  0xe1   :  { %v85_v20 = vpop.f32.mrb[2].mxu0  ;;  %v141_v24 = vpop.f32.mrb[2].mxu1  ;;  %v363_v22 = vld [vmem:[%s1969_s0 + $0x2] sm:$0x1] }
  0xe2   :  { %v1452_v23 = vpop.f32.mrb[3].mxu0  ;;  %v151_v25 = vadd.f32 %v1713_v19, %v139_v21  ;;  %v1460_v26 = vpop.f32.mrb[3].mxu1  ;;  %v364_v20 = vld [vmem:[%s1969_s0 + $0xa] sm:$0x1]  ;;  %v1568_v24 = vld [vmem:[%s1967_s3] sm:$0xff]  }
  0xe3   :  { %v366_v21 = vpack.c.bf16 %v364_v20, %v364_v20  ;;  %v367_v23 = vld [vmem:[%s1968_s1] sm:$0xf] }
  0xe4   :  { %1580 = vtanh.f32 %v151_v25  ;;  %v1364_v29 = vmul.f32 -1.442695, %v151_v25  ;;  %v365_v25 = vpack.c.bf16 %v363_v22, %v363_v22 }
  0xe5   :  { %v371_v26 = vunpack.c.l.b16 %v366_v21 }
  0xe6   :  { %1582 = vpow2.f32 %v1364_v29  ;;  %v370_v29 = vunpack.c.l.b16 %v365_v25 }
  0xe7   :  { %v249_v60 = vpop.f32.mrb[4].mxu0 }
  0xe8   :  { %v1465_v61 = vpop.f32.mrb[5].mxu0 }
  0xe9   :  { %v252_v62 = vpop.f32.mrb[6].mxu0 }
  0xea   :  { %v1466_v63 = vpop.f32.mrb[7].mxu0  ;;  %v530_v62 = vld [vmem:[%s1969_s0 + $0xb] sm:$0x1] }
  0xeb   :  { %v532_v63 = vpack.c.bf16 %v530_v62, %v530_v62 }
  0xee   :  { %v1581_v27 = vpop.eup %1580 }
  0xef   :  { %166 = vrot.lane.b32.xlu0 %v1581_v27, %s1646_s27  ;;  %v379_v27 = vsel %vm44_vm0, %v367_v23, 0 }
  0xf0   :  { %v1583_v30 = vpop.eup %1582  ;;  %1476 = vmatpush3.bf16.msra.mxu0 %v379_v27 }
  0xf1   :  { %v155_v31 = vadd.f32 1.0, %v1583_v30  ;;  %v372_v30 = vrot.slane %v371_v26, 7  ;;  %1489 = vmatprep.subr.bf16.mxu0 %v1644_v0 }
  0xf3   :  { %161 = vrot.lane.b32.xlu0 %v159_v28, %s1646_s27  ;;  %1584 = vrcp.f32 %v155_v31  ;;  %v1569_v28 = vld [vmem:[%s1967_s3 + $0x8] sm:$0xff]   ;;  %v373_v31 = vsel %vm37_vm1, %v372_v30, %v370_v29 }
  0xfd   :  { %v1585_v32 = vpop.eup %1584 }
 0x161   :  { %v167_v33 = vpop.permute.xlu0 %166 }
 0x162   :  { %v169_v34 = vmul.f32 %v1585_v32, %v167_v33 }
 0x164   :  { %171 = vrot.lane.b32.xlu1 %v169_v34, %s1646_s27 }
 0x165   :  { %v162_v35 = vpop.permute.xlu0 %161 }
 0x166   :  { %v164_v36 = vmul.f32 %v1585_v32, %v162_v35 }
 0x1d6   :  { %v172_v37 = vpop.permute.xlu1 %171 }
 0x1d7   :  { %v174_v38 = vadd.f32 %v172_v37, %v164_v36 }
 0x1d9   :  { %1586 = vtanh.f32 %v174_v38 }
 0x1e3   :  { %v1587_v39 = vpop.eup %1586 }
 0x1e4   :  { %177 = vrot.lane.b32.xlu1 %v1587_v39, %s1646_s27 }
 0x1e8   :  { %182 = vrot.lane.b32.xlu1 %v174_v38, %s1647_s2 }
 0x256   :  { %v178_v53 = vpop.permute.xlu1 %177 }
 0x257   :  { %v180_v54 = vmul.f32 %v1585_v32, %v178_v53  ;;  %v374_v32 = vpack.c.b16 %v373_v31, %v373_v31 }
 0x259   :  { %187 = vrot.lane.b32.xlu0 %v180_v54, %s1648_s12  ;;  %1478 = vmatmul.mubr.msk.bf16.vlgmr.msra.gmra.mrb[8].mxu0 %vm40_vm3, %v374_v32 }
 0x25a   :  { %v183_v55 = vpop.permute.xlu1 %182  ;;  %1491 = vmatprep.mubr.msk.bf16.mxu0 %vm1645_vm2, %v1644_v0 }
 0x25b   :  { %185 = vst.msk [vmem:[#allocation3] sm:$0x3] %vm18_vm4, %v183_v55 }
 0x262   :  { %v325_v56 = vld [vmem:[#allocation3] sm:$0x3] }
 0x263   :  { %327 = vrot.lane.b32.xlu1 %v325_v56, %s1646_s27 }
 0x2cb   :  { %v188_v57 = vpop.permute.xlu0 %187 }
 0x2cc   :  { %190 = vst.msk [vmem:[#allocation2] sm:$0x3] %vm18_vm4, %v188_v57 }
 0x2d3   :  { %v191_v58 = vld [vmem:[#allocation2] sm:$0x3] }
 0x2d4   :  { %v192_v59 = vpack.c.bf16 %v191_v58, %v191_v58 }
 0x2d5   :  { %v328_v14 = vpop.permute.xlu1 %327 }
 0x2d6   :  { %1472 = vmatmul.mubr.msk.bf16.vlgmr.msra.gmra.mrb[4].mxu1 %vm100_vm5, %v192_v59 }
 0x2d7   :  { %1485 = vmatprep.mubr.msk.bf16.mxu1 %vm1645_vm2, %v1644_v0  ;;  %1482 = vmatpush3.bf16.msra.mxu1 %v1568_v24 }
 0x2d8   :  { %1483 = vmatprep.subr.bf16.mxu1 %v1644_v0 }
 0x2db   :  { %1484 = vmatpush3.bf16.msra.mxu1 %v1569_v28 }
 0x2dc   :  { %1495 = vmatprep.subr.bf16.mxu1 %v1644_v0 }
 0x32c   :  { %v415_v40 = vpop.f32.mrb[8].mxu0 }
 0x32d   :  { %v1479_v41 = vpop.f32.mrb[9].mxu0 }
 0x32e   :  { %v418_v42 = vpop.f32.mrb[10].mxu0 }
 0x32f   :  { %v1480_v43 = vpop.f32.mrb[11].mxu0  ;;  %v696_v42 = vld [vmem:[%s1969_s0 + $0xc] sm:$0x1] }
 0x330   :  { %v698_v43 = vpack.c.bf16 %v696_v42, %v696_v42 }
 0x3a9   :  { %v304_v1 = vpop.f32.mrb[4].mxu1 }
 0x3aa   :  { %v305_v2 = vadd.f32 %v304_v1, %v249_v60  ;;  %v1473_v3 = vpop.f32.mrb[5].mxu1  ;;  %v529_v1 = vld [vmem:[%s1969_s0 + $0x3] sm:$0x1] }
 0x3ab   :  { %v307_v4 = vpop.f32.mrb[6].mxu1  ;;  %v1570_v3 = vld [vmem:[%s1967_s3] sm:$0xff]  }
 0x3ac   :  { %v317_v5 = vadd.f32 %v1713_v19, %v305_v2  ;;  %v1474_v6 = vpop.f32.mrb[7].mxu1  ;;  %v533_v2 = vld [vmem:[%s1968_s1] sm:$0xf]  ;;  %v531_v4 = vpack.c.bf16 %v529_v1, %v529_v1 }
 0x3ad   :  { %v545_v6 = vsel %vm44_vm0, %v533_v2, 0 }
 0x3ae   :  { %1588 = vtanh.f32 %v317_v5  ;;  %v1370_v8 = vmul.f32 -1.442695, %v317_v5  ;;  %v537_v5 = vunpack.c.l.b16 %v532_v63  ;;  %1490 = vmatpush3.bf16.msra.mxu0 %v545_v6 }
 0x3af   :  { %1503 = vmatprep.subr.bf16.mxu0 %v1644_v0 }
 0x3b0   :  { %1590 = vpow2.f32 %v1370_v8  ;;  %v536_v8 = vunpack.c.l.b16 %v531_v4 }
 0x3b8   :  { %v1589_v7 = vpop.eup %1588 }
 0x3b9   :  { %332 = vrot.lane.b32.xlu0 %v1589_v7, %s1646_s27  ;;  %v1571_v7 = vld [vmem:[%s1967_s3 + $0x8] sm:$0xff]  }
 0x3ba   :  { %v1591_v9 = vpop.eup %1590 }
 0x3bb   :  { %v321_v10 = vadd.f32 1.0, %v1591_v9  ;;  %v538_v9 = vrot.slane %v537_v5, 7 }
 0x3bd   :  { %1592 = vrcp.f32 %v321_v10  ;;  %v539_v10 = vsel %vm37_vm1, %v538_v9, %v536_v8 }
 0x3c7   :  { %v1593_v11 = vpop.eup %1592 }
 0x3c8   :  { %v330_v15 = vmul.f32 %v1593_v11, %v328_v14 }
 0x42b   :  { %v333_v12 = vpop.permute.xlu0 %332 }
 0x42c   :  { %v335_v13 = vmul.f32 %v1593_v11, %v333_v12 }
 0x42e   :  { %337 = vrot.lane.b32.xlu0 %v335_v13, %s1646_s27 }
 0x4a0   :  { %v338_v16 = vpop.permute.xlu0 %337 }
 0x4a1   :  { %v340_v17 = vadd.f32 %v338_v16, %v330_v15 }
 0x4a3   :  { %1594 = vtanh.f32 %v340_v17 }
 0x4ad   :  { %v1595_v18 = vpop.eup %1594 }
 0x4ae   :  { %343 = vrot.lane.b32.xlu1 %v1595_v18, %s1646_s27 }
 0x4b2   :  { %348 = vrot.lane.b32.xlu1 %v340_v17, %s1647_s2 }
 0x520   :  { %v344_v33 = vpop.permute.xlu1 %343 }
 0x521   :  { %v346_v34 = vmul.f32 %v1593_v11, %v344_v33  ;;  %v540_v11 = vpack.c.b16 %v539_v10, %v539_v10 }
 0x523   :  { %353 = vrot.lane.b32.xlu0 %v346_v34, %s1648_s12  ;;  %1492 = vmatmul.mubr.msk.bf16.vlgmr.msra.gmra.mrb[12].mxu0 %vm40_vm3, %v540_v11 }
 0x524   :  { %v349_v35 = vpop.permute.xlu1 %348  ;;  %1505 = vmatprep.mubr.msk.bf16.mxu0 %vm1645_vm2, %v1644_v0 }
 0x525   :  { %351 = vst.msk [vmem:[#allocation3] sm:$0x3] %vm18_vm4, %v349_v35 }
 0x52c   :  { %v491_v36 = vld [vmem:[#allocation3] sm:$0x3] }
 0x52d   :  { %493 = vrot.lane.b32.xlu1 %v491_v36, %s1646_s27 }
 0x595   :  { %v354_v37 = vpop.permute.xlu0 %353 }
 0x596   :  { %356 = vst.msk [vmem:[#allocation2] sm:$0x3] %vm18_vm4, %v354_v37 }
 0x59d   :  { %v357_v38 = vld [vmem:[#allocation2] sm:$0x3] }
 0x59e   :  { %v358_v39 = vpack.c.bf16 %v357_v38, %v357_v38 }
 0x59f   :  { %v494_v57 = vpop.permute.xlu1 %493 }
 0x5a0   :  { %1486 = vmatmul.mubr.msk.bf16.vlgmr.msra.gmra.mrb[8].mxu1 %vm100_vm5, %v358_v39 }
 0x5a1   :  { %1499 = vmatprep.mubr.msk.bf16.mxu1 %vm1645_vm2, %v1644_v0  ;;  %1496 = vmatpush3.bf16.msra.mxu1 %v1570_v3 }
 0x5a2   :  { %1497 = vmatprep.subr.bf16.mxu1 %v1644_v0 }
 0x5a5   :  { %1498 = vmatpush3.bf16.msra.mxu1 %v1571_v7 }
 0x5a6   :  { %1509 = vmatprep.subr.bf16.mxu1 %v1644_v0 }
 0x5f6   :  { %v581_v20 = vpop.f32.mrb[12].mxu0 }
 0x5f7   :  { %v1493_v21 = vpop.f32.mrb[13].mxu0 }
 0x5f8   :  { %v584_v22 = vpop.f32.mrb[14].mxu0 }
 0x5f9   :  { %v1494_v23 = vpop.f32.mrb[15].mxu0  ;;  %v862_v22 = vld [vmem:[%s1969_s0 + $0xd] sm:$0x1] }
 0x5fa   :  { %v864_v23 = vpack.c.bf16 %v862_v22, %v862_v22 }
 0x673   :  { %v470_v44 = vpop.f32.mrb[8].mxu1 }
 0x674   :  { %v471_v45 = vadd.f32 %v470_v44, %v415_v40  ;;  %v1487_v46 = vpop.f32.mrb[9].mxu1  ;;  %v695_v44 = vld [vmem:[%s1969_s0 + $0x4] sm:$0x1] }
 0x675   :  { %v473_v47 = vpop.f32.mrb[10].mxu1  ;;  %v1572_v46 = vld [vmem:[%s1967_s3] sm:$0xff]  }
 0x676   :  { %v483_v48 = vadd.f32 %v1713_v19, %v471_v45  ;;  %v1488_v49 = vpop.f32.mrb[11].mxu1  ;;  %v699_v45 = vld [vmem:[%s1968_s1] sm:$0xf]  ;;  %v697_v47 = vpack.c.bf16 %v695_v44, %v695_v44 }
 0x677   :  { %v711_v49 = vsel %vm44_vm0, %v699_v45, 0 }
 0x678   :  { %1596 = vtanh.f32 %v483_v48  ;;  %v1376_v51 = vmul.f32 -1.442695, %v483_v48  ;;  %v703_v48 = vunpack.c.l.b16 %v698_v43  ;;  %1504 = vmatpush3.bf16.msra.mxu0 %v711_v49 }
 0x679   :  { %1517 = vmatprep.subr.bf16.mxu0 %v1644_v0 }
 0x67a   :  { %1598 = vpow2.f32 %v1376_v51  ;;  %v702_v51 = vunpack.c.l.b16 %v697_v47 }
 0x682   :  { %v1597_v50 = vpop.eup %1596 }
 0x683   :  { %498 = vrot.lane.b32.xlu0 %v1597_v50, %s1646_s27  ;;  %v1573_v50 = vld [vmem:[%s1967_s3 + $0x8] sm:$0xff]  }
 0x684   :  { %v1599_v52 = vpop.eup %1598 }
 0x685   :  { %v487_v53 = vadd.f32 1.0, %v1599_v52  ;;  %v704_v52 = vrot.slane %v703_v48, 7 }
 0x687   :  { %1600 = vrcp.f32 %v487_v53  ;;  %v705_v53 = vsel %vm37_vm1, %v704_v52, %v702_v51 }
 0x691   :  { %v1601_v54 = vpop.eup %1600 }
 0x692   :  { %v496_v58 = vmul.f32 %v1601_v54, %v494_v57 }
 0x6f5   :  { %v499_v55 = vpop.permute.xlu0 %498 }
 0x6f6   :  { %v501_v56 = vmul.f32 %v1601_v54, %v499_v55 }
 0x6f8   :  { %503 = vrot.lane.b32.xlu0 %v501_v56, %s1646_s27 }
 0x76a   :  { %v504_v59 = vpop.permute.xlu0 %503 }
 0x76b   :  { %v506_v60 = vadd.f32 %v504_v59, %v496_v58 }
 0x76d   :  { %1602 = vtanh.f32 %v506_v60 }
 0x777   :  { %v1603_v61 = vpop.eup %1602 }
 0x778   :  { %509 = vrot.lane.b32.xlu1 %v1603_v61, %s1646_s27 }
 0x77c   :  { %514 = vrot.lane.b32.xlu1 %v506_v60, %s1647_s2 }
 0x7ea   :  { %v510_v12 = vpop.permute.xlu1 %509 }
 0x7eb   :  { %v512_v13 = vmul.f32 %v1601_v54, %v510_v12  ;;  %v706_v54 = vpack.c.b16 %v705_v53, %v705_v53 }
 0x7ed   :  { %519 = vrot.lane.b32.xlu0 %v512_v13, %s1648_s12  ;;  %1506 = vmatmul.mubr.msk.bf16.vlgmr.msra.gmra.mrb[16].mxu0 %vm40_vm3, %v706_v54 }
 0x7ee   :  { %v515_v14 = vpop.permute.xlu1 %514  ;;  %1519 = vmatprep.mubr.msk.bf16.mxu0 %vm1645_vm2, %v1644_v0 }
 0x7ef   :  { %517 = vst.msk [vmem:[#allocation3] sm:$0x3] %vm18_vm4, %v515_v14 }
 0x7f6   :  { %v657_v15 = vld [vmem:[#allocation3] sm:$0x3] }
 0x7f7   :  { %659 = vrot.lane.b32.xlu1 %v657_v15, %s1646_s27 }
 0x85f   :  { %v520_v16 = vpop.permute.xlu0 %519 }
 0x860   :  { %522 = vst.msk [vmem:[#allocation2] sm:$0x3] %vm18_vm4, %v520_v16 }
 0x867   :  { %v523_v17 = vld [vmem:[#allocation2] sm:$0x3] }
 0x868   :  { %v524_v18 = vpack.c.bf16 %v523_v17, %v523_v17 }
 0x869   :  { %v660_v37 = vpop.permute.xlu1 %659 }
 0x86a   :  { %1500 = vmatmul.mubr.msk.bf16.vlgmr.msra.gmra.mrb[12].mxu1 %vm100_vm5, %v524_v18 }
 0x86b   :  { %1513 = vmatprep.mubr.msk.bf16.mxu1 %vm1645_vm2, %v1644_v0  ;;  %1510 = vmatpush3.bf16.msra.mxu1 %v1572_v46 }
 0x86c   :  { %1511 = vmatprep.subr.bf16.mxu1 %v1644_v0 }
 0x86f   :  { %1512 = vmatpush3.bf16.msra.mxu1 %v1573_v50 }
 0x870   :  { %1523 = vmatprep.subr.bf16.mxu1 %v1644_v0 }
 0x8c0   :  { %v747_v62 = vpop.f32.mrb[16].mxu0 }
 0x8c1   :  { %v1507_v63 = vpop.f32.mrb[17].mxu0 }
 0x8c2   :  { %v750_v1 = vpop.f32.mrb[18].mxu0 }
 0x8c3   :  { %v1508_v2 = vpop.f32.mrb[19].mxu0  ;;  %v1028_v1 = vld [vmem:[%s1969_s0 + $0xe] sm:$0x1] }
 0x8c4   :  { %v1030_v2 = vpack.c.bf16 %v1028_v1, %v1028_v1 }
 0x93d   :  { %v636_v24 = vpop.f32.mrb[12].mxu1 }
 0x93e   :  { %v637_v25 = vadd.f32 %v636_v24, %v581_v20  ;;  %v1501_v26 = vpop.f32.mrb[13].mxu1  ;;  %v861_v24 = vld [vmem:[%s1969_s0 + $0x5] sm:$0x1] }
 0x93f   :  { %v639_v27 = vpop.f32.mrb[14].mxu1  ;;  %v1574_v26 = vld [vmem:[%s1967_s3] sm:$0xff]  }
 0x940   :  { %v649_v28 = vadd.f32 %v1713_v19, %v637_v25  ;;  %v1502_v29 = vpop.f32.mrb[15].mxu1  ;;  %v865_v25 = vld [vmem:[%s1968_s1] sm:$0xf]  ;;  %v863_v27 = vpack.c.bf16 %v861_v24, %v861_v24 }
 0x941   :  { %v877_v29 = vsel %vm44_vm0, %v865_v25, 0 }
 0x942   :  { %1604 = vtanh.f32 %v649_v28  ;;  %v1382_v31 = vmul.f32 -1.442695, %v649_v28  ;;  %v869_v28 = vunpack.c.l.b16 %v864_v23  ;;  %1518 = vmatpush3.bf16.msra.mxu0 %v877_v29 }
 0x943   :  { %1531 = vmatprep.subr.bf16.mxu0 %v1644_v0 }
 0x944   :  { %1606 = vpow2.f32 %v1382_v31  ;;  %v868_v31 = vunpack.c.l.b16 %v863_v27 }
 0x94c   :  { %v1605_v30 = vpop.eup %1604 }
 0x94d   :  { %664 = vrot.lane.b32.xlu0 %v1605_v30, %s1646_s27  ;;  %v1575_v30 = vld [vmem:[%s1967_s3 + $0x8] sm:$0xff]  }
 0x94e   :  { %v1607_v32 = vpop.eup %1606 }
 0x94f   :  { %v653_v33 = vadd.f32 1.0, %v1607_v32  ;;  %v870_v32 = vrot.slane %v869_v28, 7 }
 0x951   :  { %1608 = vrcp.f32 %v653_v33  ;;  %v871_v33 = vsel %vm37_vm1, %v870_v32, %v868_v31 }
 0x95b   :  { %v1609_v34 = vpop.eup %1608 }
 0x95c   :  { %v662_v38 = vmul.f32 %v1609_v34, %v660_v37 }
 0x9bf   :  { %v665_v35 = vpop.permute.xlu0 %664 }
 0x9c0   :  { %v667_v36 = vmul.f32 %v1609_v34, %v665_v35 }
 0x9c2   :  { %669 = vrot.lane.b32.xlu0 %v667_v36, %s1646_s27 }
 0xa34   :  { %v670_v39 = vpop.permute.xlu0 %669 }
 0xa35   :  { %v672_v40 = vadd.f32 %v670_v39, %v662_v38 }
 0xa37   :  { %1610 = vtanh.f32 %v672_v40 }
 0xa41   :  { %v1611_v41 = vpop.eup %1610 }
 0xa42   :  { %675 = vrot.lane.b32.xlu1 %v1611_v41, %s1646_s27 }
 0xa46   :  { %680 = vrot.lane.b32.xlu1 %v672_v40, %s1647_s2 }
 0xab4   :  { %v676_v55 = vpop.permute.xlu1 %675 }
 0xab5   :  { %v678_v56 = vmul.f32 %v1609_v34, %v676_v55  ;;  %v872_v34 = vpack.c.b16 %v871_v33, %v871_v33 }
 0xab7   :  { %685 = vrot.lane.b32.xlu0 %v678_v56, %s1648_s12  ;;  %1520 = vmatmul.mubr.msk.bf16.vlgmr.msra.gmra.mrb[20].mxu0 %vm40_vm3, %v872_v34 }
 0xab8   :  { %v681_v57 = vpop.permute.xlu1 %680  ;;  %1533 = vmatprep.mubr.msk.bf16.mxu0 %vm1645_vm2, %v1644_v0 }
 0xab9   :  { %683 = vst.msk [vmem:[#allocation3] sm:$0x3] %vm18_vm4, %v681_v57 }
 0xac0   :  { %v823_v58 = vld [vmem:[#allocation3] sm:$0x3] }
 0xac1   :  { %825 = vrot.lane.b32.xlu1 %v823_v58, %s1646_s27 }
 0xb29   :  { %v686_v59 = vpop.permute.xlu0 %685 }
 0xb2a   :  { %688 = vst.msk [vmem:[#allocation2] sm:$0x3] %vm18_vm4, %v686_v59 }
 0xb31   :  { %v689_v60 = vld [vmem:[#allocation2] sm:$0x3] }
 0xb32   :  { %v690_v61 = vpack.c.bf16 %v689_v60, %v689_v60 }
 0xb33   :  { %v826_v16 = vpop.permute.xlu1 %825 }
 0xb34   :  { %1514 = vmatmul.mubr.msk.bf16.vlgmr.msra.gmra.mrb[16].mxu1 %vm100_vm5, %v690_v61 }
 0xb35   :  { %1527 = vmatprep.mubr.msk.bf16.mxu1 %vm1645_vm2, %v1644_v0  ;;  %1524 = vmatpush3.bf16.msra.mxu1 %v1574_v26 }
 0xb36   :  { %1525 = vmatprep.subr.bf16.mxu1 %v1644_v0 }
 0xb39   :  { %1526 = vmatpush3.bf16.msra.mxu1 %v1575_v30 }
 0xb3a   :  { %1537 = vmatprep.subr.bf16.mxu1 %v1644_v0 }
 0xb8a   :  { %v913_v42 = vpop.f32.mrb[20].mxu0 }
 0xb8b   :  { %v1521_v43 = vpop.f32.mrb[21].mxu0 }
 0xb8c   :  { %v916_v44 = vpop.f32.mrb[22].mxu0 }
 0xb8d   :  { %v1522_v45 = vpop.f32.mrb[23].mxu0  ;;  %v1194_v44 = vld [vmem:[%s1969_s0 + $0xf] sm:$0x1] }
 0xb8e   :  { %v1196_v45 = vpack.c.bf16 %v1194_v44, %v1194_v44 }
 0xc07   :  { %v802_v3 = vpop.f32.mrb[16].mxu1 }
 0xc08   :  { %v803_v4 = vadd.f32 %v802_v3, %v747_v62  ;;  %v1515_v5 = vpop.f32.mrb[17].mxu1  ;;  %v1027_v3 = vld [vmem:[%s1969_s0 + $0x6] sm:$0x1] }
 0xc09   :  { %v805_v6 = vpop.f32.mrb[18].mxu1  ;;  %v1576_v5 = vld [vmem:[%s1967_s3] sm:$0xff]  }
 0xc0a   :  { %v815_v7 = vadd.f32 %v1713_v19, %v803_v4  ;;  %v1516_v8 = vpop.f32.mrb[19].mxu1  ;;  %v1031_v4 = vld [vmem:[%s1968_s1] sm:$0xf]  ;;  %v1029_v6 = vpack.c.bf16 %v1027_v3, %v1027_v3 }
 0xc0b   :  { %v1043_v8 = vsel %vm44_vm0, %v1031_v4, 0 }
 0xc0c   :  { %1612 = vtanh.f32 %v815_v7  ;;  %v1388_v10 = vmul.f32 -1.442695, %v815_v7  ;;  %v1035_v7 = vunpack.c.l.b16 %v1030_v2  ;;  %1532 = vmatpush3.bf16.msra.mxu0 %v1043_v8 }
 0xc0d   :  { %1545 = vmatprep.subr.bf16.mxu0 %v1644_v0 }
 0xc0e   :  { %1614 = vpow2.f32 %v1388_v10  ;;  %v1034_v10 = vunpack.c.l.b16 %v1029_v6 }
 0xc16   :  { %v1613_v9 = vpop.eup %1612 }
 0xc17   :  { %830 = vrot.lane.b32.xlu0 %v1613_v9, %s1646_s27  ;;  %v1577_v9 = vld [vmem:[%s1967_s3 + $0x8] sm:$0xff]  }
 0xc18   :  { %v1615_v11 = vpop.eup %1614 }
 0xc19   :  { %v819_v12 = vadd.f32 1.0, %v1615_v11  ;;  %v1036_v11 = vrot.slane %v1035_v7, 7 }
 0xc1b   :  { %1616 = vrcp.f32 %v819_v12  ;;  %v1037_v12 = vsel %vm37_vm1, %v1036_v11, %v1034_v10 }
 0xc25   :  { %v1617_v13 = vpop.eup %1616 }
 0xc26   :  { %v828_v17 = vmul.f32 %v1617_v13, %v826_v16 }
 0xc89   :  { %v831_v14 = vpop.permute.xlu0 %830 }
 0xc8a   :  { %v833_v15 = vmul.f32 %v1617_v13, %v831_v14 }
 0xc8c   :  { %835 = vrot.lane.b32.xlu0 %v833_v15, %s1646_s27 }
 0xcfe   :  { %v836_v18 = vpop.permute.xlu0 %835 }
 0xcff   :  { %v838_v20 = vadd.f32 %v836_v18, %v828_v17 }
 0xd01   :  { %1618 = vtanh.f32 %v838_v20 }
 0xd0b   :  { %v1619_v21 = vpop.eup %1618 }
 0xd0c   :  { %841 = vrot.lane.b32.xlu1 %v1619_v21, %s1646_s27 }
 0xd10   :  { %846 = vrot.lane.b32.xlu1 %v838_v20, %s1647_s2 }
 0xd7e   :  { %v842_v35 = vpop.permute.xlu1 %841 }
 0xd7f   :  { %v844_v36 = vmul.f32 %v1617_v13, %v842_v35  ;;  %v1038_v13 = vpack.c.b16 %v1037_v12, %v1037_v12 }
 0xd81   :  { %851 = vrot.lane.b32.xlu0 %v844_v36, %s1648_s12  ;;  %1534 = vmatmul.mubr.msk.bf16.vlgmr.msra.gmra.mrb[24].mxu0 %vm40_vm3, %v1038_v13 }
 0xd82   :  { %v847_v37 = vpop.permute.xlu1 %846  ;;  %1547 = vmatprep.mubr.msk.bf16.mxu0 %vm1645_vm2, %v1644_v0 }
 0xd83   :  { %849 = vst.msk [vmem:[#allocation3] sm:$0x3] %vm18_vm4, %v847_v37 }
 0xd8a   :  { %v989_v38 = vld [vmem:[#allocation3] sm:$0x3] }
 0xd8b   :  { %991 = vrot.lane.b32.xlu1 %v989_v38, %s1646_s27 }
 0xdf3   :  { %v852_v39 = vpop.permute.xlu0 %851 }
 0xdf4   :  { %854 = vst.msk [vmem:[#allocation2] sm:$0x3] %vm18_vm4, %v852_v39 }
 0xdfb   :  { %v855_v40 = vld [vmem:[#allocation2] sm:$0x3] }
 0xdfc   :  { %v856_v41 = vpack.c.bf16 %v855_v40, %v855_v40 }
 0xdfd   :  { %v992_v59 = vpop.permute.xlu1 %991 }
 0xdfe   :  { %1528 = vmatmul.mubr.msk.bf16.vlgmr.msra.gmra.mrb[20].mxu1 %vm100_vm5, %v856_v41 }
 0xdff   :  { %1541 = vmatprep.mubr.msk.bf16.mxu1 %vm1645_vm2, %v1644_v0  ;;  %1538 = vmatpush3.bf16.msra.mxu1 %v1576_v5 }
 0xe00   :  { %1539 = vmatprep.subr.bf16.mxu1 %v1644_v0 }
 0xe03   :  { %1540 = vmatpush3.bf16.msra.mxu1 %v1577_v9 }
 0xe04   :  { %1551 = vmatprep.subr.bf16.mxu1 %v1644_v0 }
 0xe54   :  { %v1079_v22 = vpop.f32.mrb[24].mxu0 }
 0xe55   :  { %v1535_v23 = vpop.f32.mrb[25].mxu0 }
 0xe56   :  { %v1082_v24 = vpop.f32.mrb[26].mxu0 }
 0xe57   :  { %v1536_v25 = vpop.f32.mrb[27].mxu0 }
 0xed1   :  { %v968_v46 = vpop.f32.mrb[20].mxu1 }
 0xed2   :  { %v969_v47 = vadd.f32 %v968_v46, %v913_v42  ;;  %v1529_v48 = vpop.f32.mrb[21].mxu1  ;;  %v1193_v46 = vld [vmem:[%s1969_s0 + $0x7] sm:$0x1] }
 0xed3   :  { %v971_v49 = vpop.f32.mrb[22].mxu1  ;;  %v1578_v48 = vld [vmem:[%s1967_s3] sm:$0xff]  }
 0xed4   :  { %v981_v50 = vadd.f32 %v1713_v19, %v969_v47  ;;  %v1530_v51 = vpop.f32.mrb[23].mxu1  ;;  %v1197_v47 = vld [vmem:[%s1968_s1] sm:$0xf]  ;;  %v1195_v49 = vpack.c.bf16 %v1193_v46, %v1193_v46 }
 0xed5   :  { %v1209_v51 = vsel %vm44_vm0, %v1197_v47, 0 }
 0xed6   :  { %1620 = vtanh.f32 %v981_v50  ;;  %v1394_v53 = vmul.f32 -1.442695, %v981_v50  ;;  %v1201_v50 = vunpack.c.l.b16 %v1196_v45  ;;  %1546 = vmatpush3.bf16.msra.mxu0 %v1209_v51 }
 0xed8   :  { %1622 = vpow2.f32 %v1394_v53  ;;  %v1200_v53 = vunpack.c.l.b16 %v1195_v49 }
 0xee0   :  { %v1621_v52 = vpop.eup %1620 }
 0xee1   :  { %996 = vrot.lane.b32.xlu0 %v1621_v52, %s1646_s27  ;;  %v1579_v52 = vld [vmem:[%s1967_s3 + $0x8] sm:$0xff]  }
 0xee2   :  { %v1623_v54 = vpop.eup %1622 }
 0xee3   :  { %v985_v55 = vadd.f32 1.0, %v1623_v54  ;;  %v1202_v54 = vrot.slane %v1201_v50, 7 }
 0xee5   :  { %1624 = vrcp.f32 %v985_v55  ;;  %v1203_v55 = vsel %vm37_vm1, %v1202_v54, %v1200_v53 }
 0xeef   :  { %v1625_v56 = vpop.eup %1624 }
 0xef0   :  { %v994_v60 = vmul.f32 %v1625_v56, %v992_v59 }
 0xf53   :  { %v997_v57 = vpop.permute.xlu0 %996 }
 0xf54   :  { %v999_v58 = vmul.f32 %v1625_v56, %v997_v57 }
 0xf56   :  { %1001 = vrot.lane.b32.xlu0 %v999_v58, %s1646_s27 }
 0xfc8   :  { %v1002_v61 = vpop.permute.xlu0 %1001 }
 0xfc9   :  { %v1004_v62 = vadd.f32 %v1002_v61, %v994_v60 }
 0xfcb   :  { %1626 = vtanh.f32 %v1004_v62 }
 0xfd5   :  { %v1627_v63 = vpop.eup %1626 }
 0xfd6   :  { %1007 = vrot.lane.b32.xlu1 %v1627_v63, %s1646_s27 }
 0xfda   :  { %1012 = vrot.lane.b32.xlu1 %v1004_v62, %s1647_s2 }
0x1048   :  { %v1008_v14 = vpop.permute.xlu1 %1007 }
0x1049   :  { %v1010_v15 = vmul.f32 %v1625_v56, %v1008_v14  ;;  %v1204_v56 = vpack.c.b16 %v1203_v55, %v1203_v55 }
0x104b   :  { %1017 = vrot.lane.b32.xlu0 %v1010_v15, %s1648_s12  ;;  %1548 = vmatmul.mubr.msk.bf16.vlgmr.msra.gmra.mrb[28].mxu0 %vm40_vm3, %v1204_v56 }
0x104c   :  { %v1013_v16 = vpop.permute.xlu1 %1012 }
0x104d   :  { %1015 = vst.msk [vmem:[#allocation3] sm:$0x3] %vm18_vm4, %v1013_v16 }
0x1054   :  { %v1155_v17 = vld [vmem:[#allocation3] sm:$0x3] }
0x1055   :  { %1157 = vrot.lane.b32.xlu1 %v1155_v17, %s1646_s27 }
0x10bd   :  { %v1018_v18 = vpop.permute.xlu0 %1017 }
0x10be   :  { %1020 = vst.msk [vmem:[#allocation2] sm:$0x3] %vm18_vm4, %v1018_v18 }
0x10c5   :  { %v1021_v20 = vld [vmem:[#allocation2] sm:$0x3] }
0x10c6   :  { %v1022_v21 = vpack.c.bf16 %v1021_v20, %v1021_v20 }
0x10c7   :  { %v1158_v39 = vpop.permute.xlu1 %1157 }
0x10c8   :  { %1542 = vmatmul.mubr.msk.bf16.vlgmr.msra.gmra.mrb[24].mxu1 %vm100_vm5, %v1022_v21 }
0x10c9   :  { %1555 = vmatprep.mubr.msk.bf16.mxu1 %vm1645_vm2, %v1644_v0  ;;  %1552 = vmatpush3.bf16.msra.mxu1 %v1578_v48 }
0x10ca   :  { %1553 = vmatprep.subr.bf16.mxu1 %v1644_v0 }
0x10cd   :  { %1554 = vmatpush3.bf16.msra.mxu1 %v1579_v52 }
0x111e   :  { %v1245_v63 = vpop.f32.mrb[28].mxu0 }
0x111f   :  { %v1549_v1 = vpop.f32.mrb[29].mxu0 }
0x1120   :  { %v1248_v2 = vpop.f32.mrb[30].mxu0 }
0x1121   :  { %v1550_v3 = vpop.f32.mrb[31].mxu0 }
0x119b   :  { %v1134_v26 = vpop.f32.mrb[24].mxu1 }
0x119c   :  { %v1135_v27 = vadd.f32 %v1134_v26, %v1079_v22  ;;  %v1543_v28 = vpop.f32.mrb[25].mxu1 }
0x119d   :  { %v1137_v29 = vpop.f32.mrb[26].mxu1 }
0x119e   :  { %v1147_v30 = vadd.f32 %v1713_v19, %v1135_v27  ;;  %v1544_v31 = vpop.f32.mrb[27].mxu1 }
0x11a0   :  { %1628 = vtanh.f32 %v1147_v30  ;;  %v1400_v33 = vmul.f32 -1.442695, %v1147_v30 }
0x11a2   :  { %1630 = vpow2.f32 %v1400_v33 }
0x11aa   :  { %v1629_v32 = vpop.eup %1628 }
0x11ab   :  { %1162 = vrot.lane.b32.xlu0 %v1629_v32, %s1646_s27 }
0x11ac   :  { %v1631_v34 = vpop.eup %1630 }
0x11ad   :  { %v1151_v35 = vadd.f32 1.0, %v1631_v34 }
0x11af   :  { %1632 = vrcp.f32 %v1151_v35 }
0x11b9   :  { %v1633_v36 = vpop.eup %1632 }
0x11ba   :  { %v1160_v40 = vmul.f32 %v1633_v36, %v1158_v39 }
0x121d   :  { %v1163_v37 = vpop.permute.xlu0 %1162 }
0x121e   :  { %v1165_v38 = vmul.f32 %v1633_v36, %v1163_v37 }
0x1220   :  { %1167 = vrot.lane.b32.xlu0 %v1165_v38, %s1646_s27 }
0x1292   :  { %v1168_v41 = vpop.permute.xlu0 %1167 }
0x1293   :  { %v1170_v42 = vadd.f32 %v1168_v41, %v1160_v40 }
0x1295   :  { %1634 = vtanh.f32 %v1170_v42 }
0x129f   :  { %v1635_v43 = vpop.eup %1634 }
0x12a0   :  { %1173 = vrot.lane.b32.xlu1 %v1635_v43, %s1646_s27 }
0x12a4   :  { %1178 = vrot.lane.b32.xlu1 %v1170_v42, %s1647_s2 }
0x1312   :  { %v1174_v57 = vpop.permute.xlu1 %1173 }
0x1313   :  { %v1176_v58 = vmul.f32 %v1633_v36, %v1174_v57 }
0x1315   :  { %1183 = vrot.lane.b32.xlu0 %v1176_v58, %s1648_s12 }
0x1316   :  { %v1179_v59 = vpop.permute.xlu1 %1178 }
0x1317   :  { %1181 = vst.msk [vmem:[#allocation3] sm:$0x3] %vm18_vm4, %v1179_v59 }
0x131e   :  { %v1321_v60 = vld [vmem:[#allocation3] sm:$0x3] }
0x131f   :  { %1323 = vrot.lane.b32.xlu1 %v1321_v60, %s1646_s27 }
0x1387   :  { %v1184_v61 = vpop.permute.xlu0 %1183 }
0x1388   :  { %1186 = vst.msk [vmem:[#allocation2] sm:$0x3] %vm18_vm4, %v1184_v61 }
0x138f   :  { %v1187_v0 = vld [vmem:[#allocation2] sm:$0x3] }
0x1390   :  { %v1188_v62 = vpack.c.bf16 %v1187_v0, %v1187_v0 }
0x1391   :  { %v1324_v17 = vpop.permute.xlu1 %1323 }
0x1392   :  { %1556 = vmatmul.mubr.msk.bf16.vlgmr.msra.gmra.mrb[28].mxu1 %vm100_vm5, %v1188_v62 }
0x1465   :  { %v1300_v4 = vpop.f32.mrb[28].mxu1 }
0x1466   :  { %v1301_v5 = vadd.f32 %v1300_v4, %v1245_v63  ;;  %v1557_v6 = vpop.f32.mrb[29].mxu1 }
0x1467   :  { %v1303_v7 = vpop.f32.mrb[30].mxu1 }
0x1468   :  { %v1313_v8 = vadd.f32 %v1713_v19, %v1301_v5  ;;  %v1558_v9 = vpop.f32.mrb[31].mxu1 }
0x146a   :  { %1636 = vtanh.f32 %v1313_v8  ;;  %v1406_v11 = vmul.f32 -1.442695, %v1313_v8 }
0x146c   :  { %1638 = vpow2.f32 %v1406_v11 }
0x1474   :  { %v1637_v10 = vpop.eup %1636 }
0x1475   :  { %1328 = vrot.lane.b32.xlu0 %v1637_v10, %s1646_s27 }
0x1476   :  { %v1639_v12 = vpop.eup %1638 }
0x1477   :  { %v1317_v13 = vadd.f32 1.0, %v1639_v12 }
0x1479   :  { %1640 = vrcp.f32 %v1317_v13 }
0x1483   :  { %v1641_v14 = vpop.eup %1640 }
0x1484   :  { %v1326_v18 = vmul.f32 %v1641_v14, %v1324_v17 }
0x14e7   :  { %v1329_v15 = vpop.permute.xlu0 %1328 }
0x14e8   :  { %v1331_v16 = vmul.f32 %v1641_v14, %v1329_v15 }
0x14ea   :  { %1333 = vrot.lane.b32.xlu0 %v1331_v16, %s1646_s27 }
0x155c   :  { %v1334_v20 = vpop.permute.xlu0 %1333 }
0x155d   :  { %v1336_v21 = vadd.f32 %v1334_v20, %v1326_v18 }
0x155f   :  { %1642 = vtanh.f32 %v1336_v21 }
0x1569   :  { %v1643_v19 = vpop.eup %1642 }
0x156a   :  { %1339 = vrot.lane.b32.xlu1 %v1643_v19, %s1646_s27 }
0x156e   :  { %1344 = vrot.lane.b32.xlu1 %v1336_v21, %s1647_s2 }
0x15dc   :  { %v1340_v22 = vpop.permute.xlu1 %1339 }
0x15dd   :  { %v1342_v23 = vmul.f32 %v1641_v14, %v1340_v22 }
0x15df   :  { %1349 = vrot.lane.b32.xlu0 %v1342_v23, %s1648_s12 }
0x15e0   :  { %v1345_v24 = vpop.permute.xlu1 %1344 }
0x15e1   :  { %1347 = vst.msk [vmem:[#allocation3] sm:$0x3] %vm18_vm4, %v1345_v24 }
0x1651   :  { %v1350_v25 = vpop.permute.xlu0 %1349 }
0x1652   :  { %1352 = vst.msk [vmem:[#allocation2] sm:$0x3] %vm18_vm4, %v1350_v25 }
0x1659   :  { %v1353_v26 = vld [vmem:[#allocation2] sm:$0x3] }
0x165a   :  { %1354 = vst.msk [vmem:[%s1971_s4] sm:$0x3] %vm18_vm4, %v1353_v26 }

</bundles_post_ra>
